<compile_context>
chip_gen: v5e
topology: v5e:2x2
jax: 0.10.0
libtpu: 0.0.40
codegen_flags: <defaults>
</compile_context>

<pallas_src>
import functools

import jax
import jax.numpy as jnp
from jax import lax
from jax.experimental import pallas as pl
from jax.experimental.pallas import tpu as pltpu


def _round_up(x, m):
    return (x + m - 1) // m * m


def _vmem_limit_bytes():
    # Budget per-generation VMEM; stay well below v7x's 64 MiB physical while
    # raising the default scoped limit (16/32 MiB) for deeper pipelining.
    try:
        cap = int(pltpu.get_tpu_info().vmem_capacity_bytes)
    except Exception:
        cap = 64 * 1024 * 1024
    return max(32 * 1024 * 1024, min(cap // 2, 56 * 1024 * 1024))


def _pick_row_block(h, w, wp, cin, cout, in_itemsize, out_itemsize):
    # Keep (double-buffered) input window + f32 acc + output tile small so the
    # pipeline stays multi-buffered on every generation.
    budget = 2 * 1024 * 1024
    per_row = wp * cin * in_itemsize + wp * cout * 4 + w * cout * out_itemsize
    th = max(1, min(h, budget // max(per_row, 1)))
    while h % th:
        th -= 1
    return int(th)


def _conv_bn_relu_kernel(x_ref, w_ref, scale_ref, bias_ref, o_ref, *,
                         th, w_out, wp, use_im2col):
    # x_ref:     (1, 1, th+2, wp, Cin)   row window (2-row halo, padded width)
    # w_ref:     (9*Cin, Cout)           if use_im2col else (9, Cin, Cout)
    # scale_ref: (1, Cout) f32           gamma / sqrt(var + eps)
    # bias_ref:  (1, Cout) f32           beta - mean * scale
    # o_ref:     (1, 1, th, w_out*Cout)  lane-dense output tile
    cin = x_ref.shape[-1]
    cout = scale_ref.shape[-1]
    m = th * wp

    # Layout-free flatten (wp is a sublane multiple).
    xflat = x_ref[0, 0].reshape((th + 2) * wp, cin)

    # 3x3 taps: kh = aligned leading-axis slice, kw = sublane roll (XLU).
    # Wrapped / out-of-window values only land in padded columns that are
    # dropped before the store.
    taps = []
    for kh in range(3):
        rows = xflat[kh * wp:kh * wp + m, :]
        for kw in range(3):
            shift = (1 - kw) % m
            taps.append(rows if shift == 0 else pltpu.roll(rows, shift, axis=0))

    if use_im2col:
        patches = jnp.concatenate(taps, axis=1)              # (m, 9*Cin)
        acc = jnp.dot(patches, w_ref[...],
                      preferred_element_type=jnp.float32)    # (m, Cout)
    else:
        acc = jnp.zeros((m, cout), jnp.float32)
        for i, tap in enumerate(taps):
            acc = acc + jnp.dot(tap, w_ref[i],
                                preferred_element_type=jnp.float32)

    y = jnp.maximum(acc * scale_ref[...] + bias_ref[...], 0.0)   # BN + ReLU (f32)
    y = y.reshape(th, wp, cout)[:, 1:w_out + 1, :]               # drop pad cols
    o_ref[0, 0] = y.reshape(th, w_out * cout).astype(o_ref.dtype)


def _bilinear_upsample_x2_align_corners(x_nchw):
    # F.interpolate(scale_factor=2, mode='bilinear', align_corners=True)
    N, C, H, W = x_nchw.shape
    Ho, Wo = 2 * H, 2 * W
    ys = jnp.arange(Ho, dtype=jnp.float32) * ((H - 1) / (Ho - 1))
    xs = jnp.arange(Wo, dtype=jnp.float32) * ((W - 1) / (Wo - 1))
    y0 = jnp.floor(ys).astype(jnp.int32)
    x0 = jnp.floor(xs).astype(jnp.int32)
    y1 = jnp.minimum(y0 + 1, H - 1)
    x1 = jnp.minimum(x0 + 1, W - 1)
    wy = (ys - y0.astype(jnp.float32))[None, None, :, None]
    wx = (xs - x0.astype(jnp.float32))[None, None, None, :]
    top = x_nchw[:, :, y0, :]
    bot = x_nchw[:, :, y1, :]
    rows = top * (1.0 - wy) + bot * wy
    left = rows[:, :, :, x0]
    right = rows[:, :, :, x1]
    return left * (1.0 - wx) + right * wx


@functools.partial(jax.jit,
                   static_argnames=("eps", "upsample", "row_block",
                                    "compute_dtype"))
def conv_bn_relu(x_nchw, w_oihw, gamma, beta, run_mean, run_var,
                 eps=1e-5, upsample=0, row_block=None, compute_dtype=None):
    N, Cin, H, W = x_nchw.shape
    Cout = w_oihw.shape[0]
    out_dtype = x_nchw.dtype
    cdt = jnp.dtype(out_dtype) if compute_dtype is None else jnp.dtype(compute_dtype)
    in_itemsize = cdt.itemsize
    out_itemsize = jnp.dtype(out_dtype).itemsize

    # Pad width to a sublane multiple so in-kernel flattens are layout-free.
    sub = 8 if in_itemsize >= 4 else 16
    wp = _round_up(W + 2, sub)

    # Row-tile size (divides H).
    if row_block is not None:
        th = max(1, min(int(row_block), H))
        while H % th:
            th -= 1
    else:
        th = _pick_row_block(H, W, wp, Cin, Cout, in_itemsize, out_itemsize)
    n_t = H // th

    # NCHW -> NHWC, zero-pad (1 row top/bottom; 1 col left, wp-W-1 cols right).
    x_nhwc = jnp.transpose(x_nchw, (0, 2, 3, 1)).astype(cdt)
    x_pad = jnp.pad(x_nhwc, ((0, 0), (1, 1), (1, wp - W - 1), (0, 0)))
    # Overlapping row windows with a 2-row halo: (N, n_t, th+2, wp, Cin).
    row_idx = jnp.arange(n_t)[:, None] * th + jnp.arange(th + 2)[None, :]
    windows = x_pad[:, row_idx]

    # Weights: OIHW -> HWIO, laid out for the chosen matmul structure.
    w_hwio = jnp.transpose(w_oihw, (2, 3, 1, 0)).astype(cdt)   # (3,3,Cin,Cout)
    use_im2col = (9 * Cin) <= 256
    if use_im2col:
        w_k = w_hwio.reshape(9 * Cin, Cout)
        w_spec = pl.BlockSpec((9 * Cin, Cout), lambda n, t: (0, 0))
    else:
        w_k = w_hwio.reshape(9, Cin, Cout)
        w_spec = pl.BlockSpec((9, Cin, Cout), lambda n, t: (0, 0, 0))

    # Fold BatchNorm (inference statistics) into per-channel scale/bias (f32).
    scale = (gamma / jnp.sqrt(run_var + eps)).astype(jnp.float32)
    bias = (beta - run_mean * scale).astype(jnp.float32)
    scale2 = scale.reshape(1, Cout)
    bias2 = bias.reshape(1, Cout)

    kernel = functools.partial(_conv_bn_relu_kernel, th=th, w_out=W, wp=wp,
                               use_im2col=use_im2col)

    out = pl.pallas_call(
        kernel,
        out_shape=jax.ShapeDtypeStruct((N, n_t, th, W * Cout), out_dtype),
        grid=(N, n_t),
        in_specs=[
            pl.BlockSpec((1, 1, th + 2, wp, Cin), lambda n, t: (n, t, 0, 0, 0)),
            w_spec,
            pl.BlockSpec((1, Cout), lambda n, t: (0, 0)),
            pl.BlockSpec((1, Cout), lambda n, t: (0, 0)),
        ],
        out_specs=pl.BlockSpec((1, 1, th, W * Cout), lambda n, t: (n, t, 0, 0)),
        compiler_params=pltpu.CompilerParams(
            dimension_semantics=("parallel", "parallel"),
            vmem_limit_bytes=_vmem_limit_bytes()),
    )(windows, w_k, scale2, bias2)

    out_nhwc = out.reshape(N, H, W, Cout)
    out_nchw = jnp.transpose(out_nhwc, (0, 3, 1, 2))
    if upsample:
        out_nchw = _bilinear_upsample_x2_align_corners(out_nchw)
    return out_nchw


def _reference(x_nchw, w_oihw, gamma, beta, run_mean, run_var,
               eps=1e-5, upsample=0):
    y = lax.conv_general_dilated(
        x_nchw, w_oihw, window_strides=(1, 1), padding=((1, 1), (1, 1)),
        dimension_numbers=("NCHW", "OIHW", "NCHW"),
        precision=lax.Precision.HIGHEST)
    scale = (gamma / jnp.sqrt(run_var + eps))[None, :, None, None]
    shift = (beta - run_mean * gamma / jnp.sqrt(run_var + eps))[None, :, None, None]
    y = jnp.maximum(y * scale + shift, 0.0)
    if upsample:
        y = _bilinear_upsample_x2_align_corners(y)
    return y


if __name__ == "__main__":
    root = jax.random.PRNGKey(0)
    k1, k2 = jax.random.split(root, 2)

    def make_case(key, n, cin, cout, h, w):
        ks = jax.random.split(key, 6)
        x = jax.random.normal(ks[0], (n, cin, h, w), dtype=jnp.float32)
        wt = jax.random.normal(ks[1], (cout, cin, 3, 3), dtype=jnp.float32) * 0.1
        gamma = 1.0 + 0.1 * jax.random.normal(ks[2], (cout,), dtype=jnp.float32)
        beta = 0.1 * jax.random.normal(ks[3], (cout,), dtype=jnp.float32)
        mean = 0.1 * jax.random.normal(ks[4], (cout,), dtype=jnp.float32)
        var = jnp.abs(1.0 + 0.1 * jax.random.normal(ks[5], (cout,), dtype=jnp.float32))
        return x, wt, gamma, beta, mean, var

    # Case 1: small channels (im2col path), 2 row tiles (exercises the halo),
    # with and without bilinear upsample.
    args1 = make_case(k1, 2, 4, 8, 16, 16)
    for ups in (0, 1):
        out = jax.block_until_ready(
            conv_bn_relu(*args1, upsample=ups, row_block=8))
        ref = _reference(*args1, upsample=ups)
        assert out.shape == ref.shape, (out.shape, ref.shape)
        assert jnp.allclose(out, ref, atol=1e-3, rtol=1e-3), (
            float(jnp.max(jnp.abs(out - ref))))

    # Case 2: bf16 matmul operands (v6e/v7x path), auto row tiling.
    out = jax.block_until_ready(
        conv_bn_relu(*args1, compute_dtype=jnp.bfloat16))
    ref = _reference(*args1)
    assert jnp.allclose(out, ref, atol=5e-2, rtol=5e-2), (
        float(jnp.max(jnp.abs(out - ref))))

    # Case 3: larger channel count -> 9-matmul accumulation path, 2 row tiles.
    args2 = make_case(k2, 1, 32, 16, 8, 8)
    out = jax.block_until_ready(conv_bn_relu(*args2, row_block=4))
    ref = _reference(*args2)
    assert jnp.allclose(out, ref, atol=1e-3, rtol=1e-3), (
        float(jnp.max(jnp.abs(out - ref))))

    print("KERNEL_OK")
</pallas_src>

<mosaic_0001>
module attributes {stable_mosaic.version = 11 : i64} {
  func.func @_conv_bn_relu_kernel(%arg0: i32, %arg1: i32, %arg2: memref<1x1x10x24x4xf32, #tpu.memory_space<vmem>>, %arg3: memref<36x8xf32, #tpu.memory_space<vmem>>, %arg4: memref<1x8xf32, #tpu.memory_space<vmem>>, %arg5: memref<1x8xf32, #tpu.memory_space<vmem>>, %arg6: memref<1x1x8x128xf32, #tpu.memory_space<vmem>>) attributes {dimension_semantics = [#tpu.dimension_semantics<parallel>, #tpu.dimension_semantics<parallel>], iteration_bounds = array<i64: 2, 2>, scalar_prefetch = 0 : i64, scratch_operands = 0 : i64, tpu.core_type = #tpu.core_type<tc>, window_params = [{transform_indices = @transform_0, window_bounds = array<i64: 1, 1, 10, 24, 4>}, {pipeline_mode = #tpu.pipeline_mode<synchronous>, transform_indices = @transform_1, window_bounds = array<i64: 36, 8>}, {pipeline_mode = #tpu.pipeline_mode<synchronous>, transform_indices = @transform_2, window_bounds = array<i64: 1, 8>}, {pipeline_mode = #tpu.pipeline_mode<synchronous>, transform_indices = @transform_3, window_bounds = array<i64: 1, 8>}, {transform_indices = @transform_4, window_bounds = array<i64: 1, 1, 8, 128>}]} {
    %c0 = arith.constant 0 : index
    %c0_0 = arith.constant 0 : index
    %c0_1 = arith.constant 0 : index
    %c0_2 = arith.constant 0 : index
    %c0_3 = arith.constant 0 : index
    %0 = vector.load %arg2[%c0, %c0_0, %c0_1, %c0_2, %c0_3] : memref<1x1x10x24x4xf32, #tpu.memory_space<vmem>>, vector<1x1x10x24x4xf32>
    %1 = vector.shape_cast %0 : vector<1x1x10x24x4xf32> to vector<10x24x4xf32>
    %2 = vector.shape_cast %1 : vector<10x24x4xf32> to vector<240x4xf32>
    %3 = vector.extract_strided_slice %2 {offsets = [0, 0], sizes = [192, 4], strides = [1, 1]} : vector<240x4xf32> to vector<192x4xf32>
    %c1_i32 = arith.constant 1 : i32
    %4 = tpu.dynamic_rotate %3 by %c1_i32 dim 0 : vector<192x4xf32>, i32 -> vector<192x4xf32>
    %c191_i32 = arith.constant 191 : i32
    %5 = tpu.dynamic_rotate %3 by %c191_i32 dim 0 : vector<192x4xf32>, i32 -> vector<192x4xf32>
    %6 = vector.extract_strided_slice %2 {offsets = [24, 0], sizes = [192, 4], strides = [1, 1]} : vector<240x4xf32> to vector<192x4xf32>
    %c1_i32_4 = arith.constant 1 : i32
    %7 = tpu.dynamic_rotate %6 by %c1_i32_4 dim 0 : vector<192x4xf32>, i32 -> vector<192x4xf32>
    %c191_i32_5 = arith.constant 191 : i32
    %8 = tpu.dynamic_rotate %6 by %c191_i32_5 dim 0 : vector<192x4xf32>, i32 -> vector<192x4xf32>
    %9 = vector.extract_strided_slice %2 {offsets = [48, 0], sizes = [192, 4], strides = [1, 1]} : vector<240x4xf32> to vector<192x4xf32>
    %c1_i32_6 = arith.constant 1 : i32
    %10 = tpu.dynamic_rotate %9 by %c1_i32_6 dim 0 : vector<192x4xf32>, i32 -> vector<192x4xf32>
    %c191_i32_7 = arith.constant 191 : i32
    %11 = tpu.dynamic_rotate %9 by %c191_i32_7 dim 0 : vector<192x4xf32>, i32 -> vector<192x4xf32>
    %12 = tpu.concatenate %4, %3, %5, %7, %6, %8, %10, %9, %11 in 1 : vector<192x4xf32>, vector<192x4xf32>, vector<192x4xf32>, vector<192x4xf32>, vector<192x4xf32>, vector<192x4xf32>, vector<192x4xf32>, vector<192x4xf32>, vector<192x4xf32> -> vector<192x36xf32>
    %c0_8 = arith.constant 0 : index
    %c0_9 = arith.constant 0 : index
    %13 = vector.load %arg3[%c0_8, %c0_9] : memref<36x8xf32, #tpu.memory_space<vmem>>, vector<36x8xf32>
    %cst = arith.constant dense<0.000000e+00> : vector<192x8xf32>
    %14 = tpu.matmul %12, %13, %cst {dimension_numbers = #tpu.dot_dimension_numbers<[1], [0], [0], [1], [0, 0, 1, 1], [], []>} : vector<192x36xf32>, vector<36x8xf32>, vector<192x8xf32> -> vector<192x8xf32>
    %c0_10 = arith.constant 0 : index
    %c0_11 = arith.constant 0 : index
    %15 = vector.load %arg4[%c0_10, %c0_11] : memref<1x8xf32, #tpu.memory_space<vmem>>, vector<1x8xf32>
    %16 = vector.broadcast %15 : vector<1x8xf32> to vector<192x8xf32>
    %17 = arith.mulf %14, %16 : vector<192x8xf32>
    %c0_12 = arith.constant 0 : index
    %c0_13 = arith.constant 0 : index
    %18 = vector.load %arg5[%c0_12, %c0_13] : memref<1x8xf32, #tpu.memory_space<vmem>>, vector<1x8xf32>
    %19 = vector.broadcast %18 : vector<1x8xf32> to vector<192x8xf32>
    %20 = arith.addf %17, %19 : vector<192x8xf32>
    %cst_14 = arith.constant 0.000000e+00 : f32
    %21 = vector.broadcast %cst_14 : f32 to vector<192x8xf32>
    %22 = arith.maximumf %20, %21 : vector<192x8xf32>
    %23 = vector.shape_cast %22 : vector<192x8xf32> to vector<8x24x8xf32>
    %24 = vector.extract_strided_slice %23 {offsets = [0, 1, 0], sizes = [8, 16, 8], strides = [1, 1, 1]} : vector<8x24x8xf32> to vector<8x16x8xf32>
    %25 = vector.shape_cast %24 : vector<8x16x8xf32> to vector<8x128xf32>
    %c0_15 = arith.constant 0 : index
    %c0_16 = arith.constant 0 : index
    %c0_17 = arith.constant 0 : index
    %c0_18 = arith.constant 0 : index
    %26 = vector.load %arg6[%c0_15, %c0_16, %c0_17, %c0_18] : memref<1x1x8x128xf32, #tpu.memory_space<vmem>>, vector<1x1x8x128xf32>
    %27 = vector.shape_cast %26 : vector<1x1x8x128xf32> to vector<8x128xf32>
    %28 = vector.shape_cast %25 : vector<8x128xf32> to vector<1x1x8x128xf32>
    tpu.vector_store %arg6[%c0_15, %c0_16, %c0_17, %c0_18], %28 {strides = array<i32>} : memref<1x1x8x128xf32, #tpu.memory_space<vmem>>, vector<1x1x8x128xf32>,
    return
  }
  func.func @transform_0(%arg0: i32, %arg1: i32) -> (i32, i32, i32, i32, i32) {
    %c0_i32 = arith.constant 0 : i32
    %c0_i32_0 = arith.constant 0 : i32
    %c0_i32_1 = arith.constant 0 : i32
    %c0_i32_2 = arith.constant 0 : i32
    return %arg0, %arg1, %c0_i32, %c0_i32_0, %c0_i32_1 : i32, i32, i32, i32, i32
  }
  func.func @transform_1(%arg0: i32, %arg1: i32) -> (i32, i32) {
    %c0_i32 = arith.constant 0 : i32
    %c0_i32_0 = arith.constant 0 : i32
    %c0_i32_1 = arith.constant 0 : i32
    return %c0_i32, %c0_i32_0 : i32, i32
  }
  func.func @transform_2(%arg0: i32, %arg1: i32) -> (i32, i32) {
    %c0_i32 = arith.constant 0 : i32
    %c0_i32_0 = arith.constant 0 : i32
    %c0_i32_1 = arith.constant 0 : i32
    return %c0_i32, %c0_i32_0 : i32, i32
  }
  func.func @transform_3(%arg0: i32, %arg1: i32) -> (i32, i32) {
    %c0_i32 = arith.constant 0 : i32
    %c0_i32_0 = arith.constant 0 : i32
    %c0_i32_1 = arith.constant 0 : i32
    return %c0_i32, %c0_i32_0 : i32, i32
  }
  func.func @transform_4(%arg0: i32, %arg1: i32) -> (i32, i32, i32, i32) {
    %c0_i32 = arith.constant 0 : i32
    %c0_i32_0 = arith.constant 0 : i32
    %c0_i32_1 = arith.constant 0 : i32
    return %arg0, %arg1, %c0_i32, %c0_i32_0 : i32, i32, i32, i32
  }
}

</mosaic_0001>

<bundles_post_ra>
// kernel: conv_bn_relu.1
= control target key start
LH: loop header
LB: loop body
LE: loop exit
PB: predicated region body
PF: predicated region fallthrough
CT: control target
= control target key end

     0   :  { %s2200_s15 = smov 0   ;;  %s2202_s16 = smov 0   ;;  %s3914_s0 = inlined_call_operand.vmem [shape: f32[2,2,10,24,4], index: 0, kind: input, shape index: {}]   ;;  %s3915_s1 = inlined_call_operand.vmem [shape: f32[36,8], index: 1, kind: input, shape index: {}]   ;;  %s3916_s2 = inlined_call_operand.vmem [shape: f32[1,8], index: 2, kind: input, shape index: {}]   ;;  %s3917_s3 = inlined_call_operand.vmem [shape: f32[1,8], index: 3, kind: input, shape index: {}]   ;;  %s3918_s4 = inlined_call_operand.vmem [shape: f32[2,2,8,128], index: 4, kind: output, shape index: {}]  }
   0x1   :  { %s2204_s17 = smov 0   ;;  %s2206_s18 = smov 0  }
   0x2   :  { %s2208_s19 = smov 0  }
   0x3 LB: > { %s23_s20 = sadd.s32 1, %s2144_s17  ;;  %s26_s21 = sadd.s32 1, %s2148_s18  ;;  %s2152_s19 = sphi %s2208_s19, %s14_s19   ;;  %s2148_s18 = sphi %s2206_s18, %s4129_s18   ;;  %s2144_s17 = sphi %s2204_s17, %s4128_s17   ;;  %s2140_s16 = sphi %s2202_s16, %s4127_s16   ;;  %s2136_s15 = sphi %s2200_s15, %s4126_s15  }
   0x4   : > { %p24_p0 = scmp.ge.s32.totalorder %s23_s20, 2  ;;  %p1993_p1 = scmp.ge.s32.totalorder %s2152_s19, 1 }
   0x5   : > { %p182_p2 = scmp.lt.s32.totalorder %s2152_s19, 5 }
   0x6   : > { %s4131_s20 = smov (%p24_p0, %s23_s20), 0  ;;  %s4133_s21 = smov (!%p24_p0, %s26_s21), %s2148_s18 }
   0x7   : > { %p183_p3 = pnand %p1993_p1, %p182_p2  ;;  %p28_p4 = scmp.ge.s32.totalorder %s4133_s21, 2 }
   0x9   : > { %s4135_s21 = smov (%p28_p4, %s4133_s21), 0  ;;  %186 = sbr.rel (%p183_p3) target bundleno = 926 (0x39e), region = 36 }
   0xe   : > { %p215_p5 = scmp.lt.s32.totalorder %s2140_s16, 1  ;;  %p217_p6 = scmp.lt.s32.totalorder %s2136_s15, 1  ;;  %v286_v21 = vlaneseq  ;;  %vm1056_vm2 = vcmask 31744   ;;  %vm1081_vm3 = vcmask 64512   ;;  %vm1106_vm4 = vcmask 97280  }
   0xf   : > { %s2154_s29 = smov 4   ;;  %s2155_s30 = smov 8   ;;  %vm1131_vm5 = vcmask 130048   ;;  %vm1156_vm6 = vcmask 162816   ;;  %vm1334_vm7 = vcmask 1043456   ;;  %vm1181_vm8 = vcmask 195584  }
  0x10   : > { %s4137_s16 = smov (!%p215_p5, %s2140_s16), 1  ;;  %s4139_s15 = smov (!%p217_p6, %s2136_s15), 1  ;;  %v2355_v25 = vshrl.u32 %v286_v21, 7  ;;  %vm1206_vm9 = vcmask 228352   ;;  %vm1231_vm10 = vcmask 261120   ;;  %vm1261_vm11 = vcmask 293888  }
  0x11   : > { %s2040_s22 = smul.u32 60, %s4137_s16  ;;  %s2156_s5 = smov 12   ;;  %vm1531_vm12 = vcmask 1046528   ;;  %vm1589_vm13 = vcmask 1047556   ;;  %vm1877_vm14 = vcmask 326656   ;;  %vm1879_vm15 = vcmask 392192  }
  0x12   : > { %s2039_s23 = smul.u32 30, %s4139_s15  ;;  %vm337_vm0 = vcmp.lt.s32.totalorder %v2355_v25, 7  ;;  %vm288_vm1 = vcmp.lt.s32.totalorder %v2355_v25, 1  ;;  %s2157_s6 = smov 16  }
  0x13   : > { %s2158_s7 = smov 20   ;;  %s2159_s8 = smov 28  }
  0x14   : > { %s221_s24 = sadd.s32 %s2040_s22, %s2039_s23  ;;  %s2160_s9 = smov 24  }
  0x15   : > { %s1994_s25 = sshll.u32 %s221_s24, 3  ;;  %s2161_s10 = smov 32  }
  0x16   : > { %s2239_s28 = scalar_lea.vmem %s3914_s0, %s1994_s25  ;;  %s2169_s11 = smov 80  }
  0x17   : > { %v2242_v0 = vld [vmem:[%s2239_s28 + $0x20] sm:$0xff]  ;;  %v2245_v1 = vld [vmem:[%s2239_s28 + $0x10] sm:$0xff]  ;;  %v2257_v3 = vld [vmem:[%s2239_s28 + $0x28] sm:$0xff]  ;;  %s2170_s12 = smov 88   ;;  %s2171_s13 = smov 96  }
  0x18   : > { %v2248_v2 = vld [vmem:[%s2239_s28] sm:$0xff]  ;;  %422 = vrot.lane.b32.xlu2 %v2242_v0, %s2154_s29  ;;  %418 = vrot.lane.b32.xlu1 %v2245_v1, %s2154_s29  ;;  %v2260_v4 = vld [vmem:[%s2239_s28 + $0x18] sm:$0xff]  ;;  %v315_v26 = vrot.slane %v2245_v1, 1  ;;  %v318_v33 = vrot.slane %v2257_v3, 1  ;;  %v317_v35 = vrot.slane %v2242_v0, 1  ;;  %v264_v45 = vrot.slane %v2245_v1, 7 }
  0x19   : > { %414 = vrot.lane.b32.xlu0 %v2248_v2, %s2154_s29  ;;  %v2263_v5 = vld [vmem:[%s2239_s28 + $0x8] sm:$0xff]  ;;  %v2272_v6 = vld [vmem:[%s2239_s28 + $0x40] sm:$0xff]  ;;  %v2275_v7 = vld [vmem:[%s2239_s28 + $0x38] sm:$0xff]  ;;  %v2366_v28 = vrot.slane %v2260_v4, 1  ;;  %v313_v29 = vrot.slane %v2248_v2, 1  ;;  %v3919_v54 = vrot.slane %v2248_v2, 7 }
  0x1a   : > { %3978 = vst [vmem:[#allocation2_spill] sm:$0xff] %v2275_v7  ;;  %v2278_v8 = vld [vmem:[%s2239_s28 + $0x30] sm:$0xff]  ;;  %v2287_v9 = vld [vmem:[%s2239_s28 + $0x58] sm:$0xff]  ;;  %v2293_v11 = vld [vmem:[%s2239_s28 + $0x48] sm:$0xff]  ;;  %v314_v27 = vrot.slane %v2263_v5, 1  ;;  %v2394_v37 = vsel %vm337_vm0, %v317_v35, %v318_v33  ;;  %v321_v39 = vrot.slane %v2272_v6, 1 }
  0x1b   : > { %v2290_v10 = vld [vmem:[%s2239_s28 + $0x50] sm:$0xff]  ;;  %v2305_v13 = vld [vmem:[%s2239_s28 + $0x68] sm:$0xff]  ;;  %v2308_v14 = vld [vmem:[%s2239_s28 + $0x60] sm:$0xff]  ;;  %3982 = vst [vmem:[#allocation6_spill] sm:$0xff] %v2366_v28  ;;  %v358_v30 = vsel %vm337_vm0, %v315_v26, %v2366_v28  ;;  %v2384_v34 = vrot.slane %v2278_v8, 1  ;;  %v2399_v38 = vsel %vm337_vm0, %v2366_v28, %v317_v35  ;;  %v322_v40 = vrot.slane %v2293_v11, 1 }
  0x1c   : > { %v2302_v12 = vld [vmem:[%s2239_s28 + $0x70] sm:$0xff]  ;;  %3980 = vst [vmem:[#allocation4_spill] sm:$0xff] %v2305_v13  ;;  %v2317_v15 = vld [vmem:[%s2239_s28 + $0x88] sm:$0xff]  ;;  %v2320_v16 = vld [vmem:[%s2239_s28 + $0x80] sm:$0xff]  ;;  %v359_v31 = vsel %vm337_vm0, %v314_v27, %v315_v26  ;;  %v360_v32 = vsel %vm337_vm0, %v313_v29, %v314_v27  ;;  %v320_v41 = vrot.slane %v2275_v7, 1  ;;  %v263_v46 = vrot.slane %v2263_v5, 7 }
  0x1d   : > { %3979 = vst [vmem:[#allocation3_spill] sm:$0xff] %v2302_v12  ;;  %v2323_v17 = vld [vmem:[%s2239_s28 + $0x78] sm:$0xff]  ;;  %v2332_v18 = vld [vmem:[%s2239_s28 + $0xa0] sm:$0xff]  ;;  %v2338_v20 = vld [vmem:[%s2239_s28 + $0x90] sm:$0xff]  ;;  %v2390_v36 = vsel %vm337_vm0, %v318_v33, %v2384_v34  ;;  %v2412_v42 = vsel %vm337_vm0, %v321_v39, %v322_v40  ;;  %v324_v47 = vrot.slane %v2287_v9, 1  ;;  %v325_v48 = vrot.slane %v2308_v14, 1 }
  0x1e   : > { %3981 = vst [vmem:[#allocation5_spill] sm:$0xff] %v2332_v18  ;;  %v2335_v19 = vld [vmem:[%s2239_s28 + $0x98] sm:$0xff]  ;;  %v2350_v23 = vld [vmem:[%s2239_s28 + $0xb0] sm:$0xff]  ;;  %v2353_v24 = vld [vmem:[%s2239_s28 + $0xa8] sm:$0xff]  ;;  %v2416_v43 = vsel %vm337_vm0, %v320_v41, %v321_v39  ;;  %v2421_v44 = vsel %vm337_vm0, %v2384_v34, %v320_v41  ;;  %v323_v49 = vrot.slane %v2290_v10, 1  ;;  %v2437_v50 = vsel %vm288_vm1, %v263_v46, %v264_v45  ;;  %s2172_s14 = smov 104  }
  0x1f   : > { %v2347_v22 = vld [vmem:[%s2239_s28 + $0xb8] sm:$0xff]  ;;  %3983 = vst [vmem:[#allocation7_spill] sm:$0xff] %v2384_v34  ;;  %v2441_v51 = vsel %vm337_vm0, %v324_v47, %v325_v48  ;;  %v265_v55 = vrot.slane %v2260_v4, 7  ;;  %v327_v56 = vrot.slane %v2302_v12, 1  ;;  %v328_v57 = vrot.slane %v2323_v17, 1  ;;  %s2173_s22 = smov 112  }
  0x20   : > { %424 = vrot.lane.b32.xlu2 %v2257_v3, %s2154_s29  ;;  %420 = vrot.lane.b32.xlu1 %v2260_v4, %s2154_s29  ;;  %3984 = vst [vmem:[#allocation8_spill] sm:$0xff] %v2412_v42  ;;  %v2445_v52 = vsel %vm337_vm0, %v323_v49, %v324_v47  ;;  %v2449_v53 = vsel %vm337_vm0, %v322_v40, %v323_v49  ;;  %v326_v58 = vrot.slane %v2305_v13, 1  ;;  %v331_v21 = vrot.slane %v2338_v20, 1  ;;  %s2174_s23 = smov 120   ;;  %s1995_s24 = sshll.u32 %s4137_s16, 1 }
  0x21   : > { %416 = vrot.lane.b32.xlu0 %v2263_v5, %s2154_s29  ;;  %3985 = vst [vmem:[#allocation9_spill] sm:$0xff] %v2416_v43  ;;  %v2466_v60 = vsel %vm288_vm1, %v264_v45, %v265_v55  ;;  %v2472_v61 = vsel %vm288_vm1, %v3919_v54, %v263_v46  ;;  %v2476_v62 = vsel %vm337_vm0, %v327_v56, %v328_v57  ;;  %v330_v5 = vrot.slane %v2317_v15, 1  ;;  %s229_s25 = sadd.s32 %s1995_s24, %s4139_s15 }
  0x22   : > { %3986 = vst [vmem:[#allocation10_spill] sm:$0xff] %v2441_v51  ;;  %v2480_v63 = vsel %vm337_vm0, %v326_v58, %v327_v56  ;;  %v2484_v1 = vsel %vm337_vm0, %v325_v48, %v326_v58  ;;  %v329_v26 = vrot.slane %v2320_v16, 1  ;;  %v333_v33 = vrot.slane %v2332_v18, 1  ;;  %s1996_s26 = sshll.u32 %s229_s25, 3 }
  0x23   : > { %3987 = vst [vmem:[#allocation11_spill] sm:$0xff] %v2445_v52  ;;  %v334_v35 = vrot.slane %v2353_v24, 1  ;;  %v332_v39 = vrot.slane %v2335_v19, 1  ;;  %v335_v47 = vrot.slane %v2350_v23, 1  ;;  %v2540_v48 = vrot.slane %v2347_v22, 1 }
  0x24   : > { %3988 = vst [vmem:[#allocation12_spill] sm:$0xff] %v2449_v53 }
  0x25   : > { %3990 = vst [vmem:[#allocation14_spill] sm:$0xff] %v2466_v60  ;;  %v2522_v41 = vsel %vm337_vm0, %v333_v33, %v334_v35  ;;  %v2526_v45 = vsel %vm337_vm0, %v332_v39, %v333_v33  ;;  %v2530_v46 = vsel %vm337_vm0, %v331_v21, %v332_v39  ;;  %v2551_v58 = vsel %vm337_vm0, %v335_v47, %v2540_v48 }
  0x26   : > { %3991 = vst [vmem:[#allocation15_spill] sm:$0xff] %v2476_v62  ;;  %v273_v60 = vrot.slane %v2287_v9, 7 }
  0x27   : > { %3996 = vst [vmem:[#allocation20_spill] sm:$0xff] %v2522_v41 }
  0x28   : > { %430 = vrot.lane.b32.xlu2 %v2272_v6, %s2154_s29  ;;  %428 = vrot.lane.b32.xlu1 %v2275_v7, %s2154_s29  ;;  %3997 = vst [vmem:[#allocation21_spill] sm:$0xff] %v2540_v48 }
  0x29   : > { %426 = vrot.lane.b32.xlu0 %v2278_v8, %s2154_s29  ;;  %4000 = vst [vmem:[#allocation24_spill] sm:$0xff] %v2551_v58 }
  0x30   : > { %436 = vrot.lane.b32.xlu2 %v2287_v9, %s2154_s29  ;;  %434 = vrot.lane.b32.xlu1 %v2290_v10, %s2154_s29 }
  0x31   : > { %432 = vrot.lane.b32.xlu0 %v2293_v11, %s2154_s29 }
  0x38   : > { %442 = vrot.lane.b32.xlu2 %v2302_v12, %s2154_s29  ;;  %440 = vrot.lane.b32.xlu1 %v2305_v13, %s2154_s29 }
  0x39   : > { %438 = vrot.lane.b32.xlu0 %v2308_v14, %s2154_s29 }
  0x40   : > { %448 = vrot.lane.b32.xlu2 %v2317_v15, %s2154_s29  ;;  %446 = vrot.lane.b32.xlu1 %v2320_v16, %s2154_s29 }
  0x41   : > { %444 = vrot.lane.b32.xlu0 %v2323_v17, %s2154_s29 }
  0x48   : > { %454 = vrot.lane.b32.xlu2 %v2332_v18, %s2154_s29  ;;  %452 = vrot.lane.b32.xlu1 %v2335_v19, %s2154_s29 }
  0x49   : > { %450 = vrot.lane.b32.xlu0 %v2338_v20, %s2154_s29 }
  0x50   : > { %460 = vrot.lane.b32.xlu2 %v2347_v22, %s2154_s29  ;;  %458 = vrot.lane.b32.xlu1 %v2350_v23, %s2154_s29 }
  0x51   : > { %456 = vrot.lane.b32.xlu0 %v2353_v24, %s2154_s29  ;;  %s231_s29 = scalar_lea.vmem %s3918_s4, %s1996_s26 }
  0x58   : > { %514 = vrot.lane.b32.xlu2 %v358_v30, %s2155_s30  ;;  %512 = vrot.lane.b32.xlu1 %v359_v31, %s2155_s30  ;;  %v2499_v30 = vsel %vm337_vm0, %v330_v5, %v331_v21  ;;  %v2503_v31 = vsel %vm337_vm0, %v329_v26, %v330_v5  ;;  %v361_v5 = vsel %vm337_vm0, %v2540_v48, %v313_v29 }
  0x59   : > { %510 = vrot.lane.b32.xlu0 %v360_v32, %s2155_s30  ;;  %3992 = vst [vmem:[#allocation16_spill] sm:$0xff] %v2499_v30  ;;  %v2507_v32 = vsel %vm337_vm0, %v328_v57, %v329_v26  ;;  %v2560_v21 = vsel %vm337_vm0, %v334_v35, %v335_v47  ;;  %v2563_v26 = vld [vmem:[%s2239_s28 + $0xd0] sm:$0xff]  ;;  %v266_v35 = vrot.slane %v2242_v0, 7  ;;  %v267_v47 = vrot.slane %v2257_v3, 7 }
  0x5a   : > { %3993 = vst [vmem:[#allocation17_spill] sm:$0xff] %v2503_v31  ;;  %v2575_v29 = vrot.slane %v2563_v26, 7 }
  0x5b   : > { %3994 = vst [vmem:[#allocation18_spill] sm:$0xff] %v2507_v32  ;;  %v2586_v34 = vsel %vm288_vm1, %v265_v55, %v266_v35  ;;  %v2590_v28 = vsel %vm288_vm1, %v266_v35, %v267_v47  ;;  %v2604_v35 = vrot.slane %v2278_v8, 7 }
  0x5c   : > { %4003 = vst [vmem:[#allocation27_spill] sm:$0xff] %v2575_v29 }
  0x5d   : > { %4004 = vst [vmem:[#allocation28_spill] sm:$0xff] %v2586_v34 }
  0x5e   : > { %4007 = vst [vmem:[#allocation31_spill] sm:$0xff] %v2604_v35 }
  0x60   : > { %520 = vrot.lane.b32.xlu2 %v2390_v36, %s2155_s30  ;;  %518 = vrot.lane.b32.xlu1 %v2394_v37, %s2155_s30 }
  0x61   : > { %516 = vrot.lane.b32.xlu0 %v2399_v38, %s2155_s30 }
  0x68   : > { %526 = vrot.lane.b32.xlu2 %v2412_v42, %s2155_s30  ;;  %524 = vrot.lane.b32.xlu1 %v2416_v43, %s2155_s30 }
  0x69   : > { %522 = vrot.lane.b32.xlu0 %v2421_v44, %s2155_s30 }
  0x70   : > { %532 = vrot.lane.b32.xlu2 %v2441_v51, %s2155_s30  ;;  %530 = vrot.lane.b32.xlu1 %v2445_v52, %s2155_s30 }
  0x71   : > { %528 = vrot.lane.b32.xlu0 %v2449_v53, %s2155_s30 }
  0x72   : > { %v2462_v59 = vpop.permute.xlu2 %422 }
  0x73   : > { %3989 = vst [vmem:[#allocation13_spill] sm:$0xff] %v2462_v59 }
  0x78   : > { %538 = vrot.lane.b32.xlu2 %v2476_v62, %s2155_s30  ;;  %536 = vrot.lane.b32.xlu1 %v2480_v63, %s2155_s30 }
  0x79   : > { %534 = vrot.lane.b32.xlu0 %v2484_v1, %s2155_s30 }
  0x7a   : > { %v2495_v27 = vpop.permute.xlu2 %424 }
  0x80   : > { %544 = vrot.lane.b32.xlu2 %v2499_v30, %s2155_s30  ;;  %542 = vrot.lane.b32.xlu1 %v2503_v31, %s2155_s30 }
  0x81   : > { %540 = vrot.lane.b32.xlu0 %v2507_v32, %s2155_s30 }
  0x82   : > { %v2518_v40 = vpop.permute.xlu2 %430 }
  0x83   : > { %3995 = vst [vmem:[#allocation19_spill] sm:$0xff] %v2518_v40  ;;  %v270_v40 = vrot.slane %v2272_v6, 7 }
  0x88   : > { %550 = vrot.lane.b32.xlu2 %v2522_v41, %s2155_s30  ;;  %548 = vrot.lane.b32.xlu1 %v2526_v45, %s2155_s30 }
  0x89   : > { %546 = vrot.lane.b32.xlu0 %v2530_v46, %s2155_s30 }
  0x8a   : > { %v2542_v49 = vpop.permute.xlu2 %436  ;;  %v2544_v56 = vpop.permute.xlu1 %418 }
  0x8b   : > { %3998 = vst [vmem:[#allocation22_spill] sm:$0xff] %v2542_v49  ;;  %v2546_v57 = vpop.permute.xlu0 %414 }
  0x8c   : > { %3999 = vst [vmem:[#allocation23_spill] sm:$0xff] %v2546_v57 }
  0x90   : > { %554 = vrot.lane.b32.xlu1 %v2551_v58, %s2155_s30  ;;  %556 = vrot.lane.b32.xlu2 %v361_v5, %s2155_s30  ;;  %v368_v5 = vsel %vm288_vm1, %v2575_v29, %v265_v55  ;;  %v269_v55 = vrot.slane %v2275_v7, 7 }
  0x91   : > { %552 = vrot.lane.b32.xlu0 %v2560_v21, %s2155_s30 }
  0x92   : > { %v2570_v33 = vpop.permute.xlu2 %442  ;;  %v2572_v39 = vpop.permute.xlu1 %420  ;;  %v2610_v58 = vsel %vm288_vm1, %v269_v55, %v270_v40 }
  0x93   : > { %4001 = vst [vmem:[#allocation25_spill] sm:$0xff] %v2570_v33  ;;  %v2579_v54 = vpop.permute.xlu0 %416  ;;  %v283_v33 = vrot.slane %v2353_v24, 7 }
  0x94   : > { %4002 = vst [vmem:[#allocation26_spill] sm:$0xff] %v2572_v39 }
  0x95   : > { %4009 = vst [vmem:[#allocation33_spill] sm:$0xff] %v2610_v58 }
  0x98   : > { %608 = vrot.lane.b32.xlu1 %v2586_v34, %s2156_s5  ;;  %610 = vrot.lane.b32.xlu2 %v2590_v28, %s2156_s5 }
  0x99   : > { %606 = vrot.lane.b32.xlu0 %v368_v5, %s2156_s5  ;;  %v2615_v5 = vsel %vm288_vm1, %v2604_v35, %v269_v55  ;;  %v272_v55 = vrot.slane %v2290_v10, 7 }
  0x9a   : > { %v2597_v41 = vpop.permute.xlu2 %448  ;;  %v2599_v49 = vpop.permute.xlu1 %428  ;;  %4010 = vst [vmem:[#allocation34_spill] sm:$0xff] %v2615_v5 }
  0x9b   : > { %4005 = vst [vmem:[#allocation29_spill] sm:$0xff] %v2597_v41  ;;  %v2606_v48 = vpop.permute.xlu0 %426 }
  0x9c   : > { %4006 = vst [vmem:[#allocation30_spill] sm:$0xff] %v2599_v49  ;;  %v2620_v49 = vsel %vm288_vm1, %v267_v47, %v2604_v35  ;;  %v271_v47 = vrot.slane %v2293_v11, 7 }
  0x9d   : > { %4008 = vst [vmem:[#allocation32_spill] sm:$0xff] %v2606_v48 }
  0x9e   : > { %4011 = vst [vmem:[#allocation35_spill] sm:$0xff] %v2620_v49 }
  0xa0   : > { %614 = vrot.lane.b32.xlu1 %v2615_v5, %s2156_s5  ;;  %616 = vrot.lane.b32.xlu2 %v2610_v58, %s2156_s5  ;;  %v2639_v5 = vsel %vm288_vm1, %v272_v55, %v273_v60  ;;  %v2643_v58 = vsel %vm288_vm1, %v271_v47, %v272_v55  ;;  %v275_v55 = vrot.slane %v2305_v13, 7 }
  0xa1   : > { %612 = vrot.lane.b32.xlu0 %v2620_v49, %s2156_s5  ;;  %4015 = vst [vmem:[#allocation39_spill] sm:$0xff] %v2639_v5  ;;  %v276_v49 = vrot.slane %v2302_v12, 7 }
  0xa2   : > { %v2628_v48 = vpop.permute.xlu2 %454  ;;  %v2630_v41 = vpop.permute.xlu1 %434  ;;  %4016 = vst [vmem:[#allocation40_spill] sm:$0xff] %v2643_v58 }
  0xa3   : > { %4012 = vst [vmem:[#allocation36_spill] sm:$0xff] %v2628_v48  ;;  %v2635_v35 = vpop.permute.xlu0 %432  ;;  %v2647_v48 = vsel %vm288_vm1, %v270_v40, %v271_v47  ;;  %v274_v40 = vrot.slane %v2308_v14, 7 }
  0xa4   : > { %4013 = vst [vmem:[#allocation37_spill] sm:$0xff] %v2630_v41 }
  0xa5   : > { %4014 = vst [vmem:[#allocation38_spill] sm:$0xff] %v2635_v35 }
  0xa6   : > { %4017 = vst [vmem:[#allocation41_spill] sm:$0xff] %v2647_v48 }
  0xa8   : > { %620 = vrot.lane.b32.xlu1 %v2643_v58, %s2156_s5  ;;  %622 = vrot.lane.b32.xlu2 %v2639_v5, %s2156_s5  ;;  %v2666_v58 = vsel %vm288_vm1, %v275_v55, %v276_v49  ;;  %v2670_v5 = vsel %vm288_vm1, %v274_v40, %v275_v55  ;;  %v278_v55 = vrot.slane %v2320_v16, 7 }
  0xa9   : > { %618 = vrot.lane.b32.xlu0 %v2647_v48, %s2156_s5  ;;  %4021 = vst [vmem:[#allocation45_spill] sm:$0xff] %v2666_v58  ;;  %v2674_v48 = vsel %vm288_vm1, %v273_v60, %v274_v40  ;;  %v277_v60 = vrot.slane %v2323_v17, 7 }
  0xaa   : > { %v2655_v35 = vpop.permute.xlu2 %460  ;;  %v2657_v41 = vpop.permute.xlu1 %440  ;;  %4022 = vst [vmem:[#allocation46_spill] sm:$0xff] %v2670_v5 }
  0xab   : > { %4018 = vst [vmem:[#allocation42_spill] sm:$0xff] %v2655_v35  ;;  %v2662_v47 = vpop.permute.xlu0 %438  ;;  %v279_v35 = vrot.slane %v2317_v15, 7  ;;  %v2697_v39 = vsel %vm288_vm1, %v277_v60, %v278_v55 }
  0xac   : > { %4019 = vst [vmem:[#allocation43_spill] sm:$0xff] %v2657_v41 }
  0xad   : > { %4020 = vst [vmem:[#allocation44_spill] sm:$0xff] %v2662_v47 }
  0xae   : > { %4023 = vst [vmem:[#allocation47_spill] sm:$0xff] %v2674_v48 }
  0xaf   : > { %4027 = vst [vmem:[#allocation51_spill] sm:$0xff] %v2697_v39 }
  0xb0   : > { %626 = vrot.lane.b32.xlu1 %v2670_v5, %s2156_s5  ;;  %628 = vrot.lane.b32.xlu2 %v2666_v58, %s2156_s5  ;;  %v2693_v5 = vsel %vm288_vm1, %v278_v55, %v279_v35  ;;  %v281_v55 = vrot.slane %v2335_v19, 7  ;;  %v282_v58 = vrot.slane %v2332_v18, 7 }
  0xb1   : > { %624 = vrot.lane.b32.xlu0 %v2674_v48, %s2156_s5  ;;  %4026 = vst [vmem:[#allocation50_spill] sm:$0xff] %v2693_v5 }
  0xb2   : > { %v2682_v47 = vpop.permute.xlu1 %446  ;;  %v2684_v41 = vpop.permute.xlu2 %514 }
  0xb3   : > { %4024 = vst [vmem:[#allocation48_spill] sm:$0xff] %v2682_v47  ;;  %v2689_v40 = vpop.permute.xlu0 %444  ;;  %v2701_v47 = vsel %vm288_vm1, %v276_v49, %v277_v60  ;;  %v280_v49 = vrot.slane %v2338_v20, 7 }
  0xb4   : > { %4025 = vst [vmem:[#allocation49_spill] sm:$0xff] %v2689_v40 }
  0xb5   : > { %4028 = vst [vmem:[#allocation52_spill] sm:$0xff] %v2701_v47 }
  0xb8   : > { %632 = vrot.lane.b32.xlu1 %v2697_v39, %s2156_s5  ;;  %634 = vrot.lane.b32.xlu2 %v2693_v5, %s2156_s5  ;;  %v2720_v39 = vsel %vm288_vm1, %v281_v55, %v282_v58 }
  0xb9   : > { %630 = vrot.lane.b32.xlu0 %v2701_v47, %s2156_s5  ;;  %4031 = vst [vmem:[#allocation55_spill] sm:$0xff] %v2720_v39  ;;  %v2724_v47 = vsel %vm288_vm1, %v280_v49, %v281_v55  ;;  %v284_v55 = vrot.slane %v2350_v23, 7 }
  0xba   : > { %v2709_v40 = vpop.permute.xlu1 %452  ;;  %v2711_v48 = vpop.permute.xlu2 %520  ;;  %4032 = vst [vmem:[#allocation56_spill] sm:$0xff] %v2724_v47 }
  0xbb   : > { %4029 = vst [vmem:[#allocation53_spill] sm:$0xff] %v2709_v40  ;;  %v2716_v60 = vpop.permute.xlu0 %450  ;;  %v2728_v40 = vsel %vm288_vm1, %v279_v35, %v280_v49  ;;  %v2745_v35 = vrot.slane %v2347_v22, 7  ;;  %v2748_v49 = vld [vmem:[%s2239_s28 + $0xc0] sm:$0xff] }
  0xbc   : > { %4030 = vst [vmem:[#allocation54_spill] sm:$0xff] %v2716_v60 }
  0xbd   : > { %4033 = vst [vmem:[#allocation57_spill] sm:$0xff] %v2728_v40 }
  0xc0   : > { %638 = vrot.lane.b32.xlu1 %v2724_v47, %s2156_s5  ;;  %640 = vrot.lane.b32.xlu2 %v2720_v39, %s2156_s5  ;;  %v2751_v47 = vld [vmem:[%s2239_s28 + $0xc8] sm:$0xff]  ;;  %v2756_v39 = vsel %vm288_vm1, %v284_v55, %v2745_v35 }
  0xc1   : > { %636 = vrot.lane.b32.xlu0 %v2728_v40, %s2156_s5  ;;  %v363_v59 = vrot.slane %v2751_v47, 7 }
  0xc2   : > { %v2736_v60 = vpop.permute.xlu1 %458  ;;  %v2738_v5 = vpop.permute.xlu2 %526 }
  0xc3   : > { %4034 = vst [vmem:[#allocation58_spill] sm:$0xff] %v2736_v60  ;;  %v2742_v34 = vpop.permute.xlu0 %456  ;;  %v2764_v60 = vsel %vm288_vm1, %v282_v58, %v283_v33 }
  0xc4   : > { %4035 = vst [vmem:[#allocation59_spill] sm:$0xff] %v2738_v5  ;;  %v2760_v5 = vsel %vm288_vm1, %v283_v33, %v284_v55  ;;  %v2787_v33 = vsel %vm288_vm1, %v363_v59, %v2575_v29 }
  0xc5   : > { %4036 = vst [vmem:[#allocation60_spill] sm:$0xff] %v2742_v34  ;;  %v362_v34 = vrot.slane %v2748_v49, 7 }
  0xc6   : > { %4037 = vst [vmem:[#allocation61_spill] sm:$0xff] %v2760_v5 }
  0xc7   : > { %4038 = vst [vmem:[#allocation62_spill] sm:$0xff] %v2764_v60  ;;  %v2782_v58 = vsel %vm288_vm1, %v362_v34, %v363_v59 }
  0xc8   : > { %644 = vrot.lane.b32.xlu1 %v2760_v5, %s2156_s5  ;;  %646 = vrot.lane.b32.xlu2 %v2756_v39, %s2156_s5  ;;  %4040 = vst [vmem:[#allocation64_spill] sm:$0xff] %v2787_v33 }
  0xc9   : > { %642 = vrot.lane.b32.xlu0 %v2764_v60, %s2156_s5  ;;  %v2792_v60 = vsel %vm288_vm1, %v2745_v35, %v362_v34 }
  0xca   : > { %v2774_v57 = vpop.permute.xlu2 %532  ;;  %v2776_v55 = vpop.permute.xlu1 %512 }
  0xcb   : > { %4039 = vst [vmem:[#allocation63_spill] sm:$0xff] %v2774_v57  ;;  %v2778_v40 = vpop.permute.xlu0 %510 }
  0xd0   : > { %650 = vrot.lane.b32.xlu1 %v2782_v58, %s2156_s5  ;;  %652 = vrot.lane.b32.xlu2 %v2787_v33, %s2156_s5 }
  0xd1   : > { %648 = vrot.lane.b32.xlu0 %v2792_v60, %s2156_s5 }
  0xd2   : > { %v2800_v57 = vpop.permute.xlu2 %538  ;;  %v2802_v5 = vpop.permute.xlu1 %518 }
  0xd3   : > { %v2804_v59 = vpop.permute.xlu0 %516 }
  0xd8   : > { %683 = vrot.lane.b32.xlu1 %v2242_v0, %s2157_s6  ;;  %685 = vrot.lane.b32.xlu2 %v2257_v3, %s2157_s6 }
  0xd9   : > { %681 = vrot.lane.b32.xlu0 %v2260_v4, %s2157_s6 }
  0xda   : > { %v2812_v34 = vpop.permute.xlu2 %544  ;;  %v2814_v29 = vpop.permute.xlu1 %524 }
  0xdb   : > { %4041 = vst [vmem:[#allocation65_spill] sm:$0xff] %v2814_v29  ;;  %v2816_v33 = vpop.permute.xlu0 %522 }
  0xe0   : > { %689 = vrot.lane.b32.xlu1 %v2275_v7, %s2157_s6  ;;  %691 = vrot.lane.b32.xlu2 %v2272_v6, %s2157_s6 }
  0xe1   : > { %687 = vrot.lane.b32.xlu0 %v2278_v8, %s2157_s6 }
  0xe2   : > { %v2824_v0 = vpop.permute.xlu2 %550  ;;  %v2826_v3 = vpop.permute.xlu1 %530 }
  0xe3   : > { %4042 = vst [vmem:[#allocation66_spill] sm:$0xff] %v2826_v3  ;;  %v2828_v4 = vpop.permute.xlu0 %528 }
  0xe4   : > { %4043 = vst [vmem:[#allocation67_spill] sm:$0xff] %v2828_v4 }
  0xe8   : > { %695 = vrot.lane.b32.xlu1 %v2290_v10, %s2157_s6  ;;  %697 = vrot.lane.b32.xlu2 %v2287_v9, %s2157_s6 }
  0xe9   : > { %693 = vrot.lane.b32.xlu0 %v2293_v11, %s2157_s6 }
  0xea   : > { %v2836_v29 = vpop.permute.xlu1 %536  ;;  %v2838_v6 = vpop.permute.xlu2 %556 }
  0xeb   : > { %v2840_v7 = vpop.permute.xlu0 %534 }
  0xf0   : > { %701 = vrot.lane.b32.xlu1 %v2305_v13, %s2157_s6  ;;  %703 = vrot.lane.b32.xlu2 %v2302_v12, %s2157_s6 }
  0xf1   : > { %699 = vrot.lane.b32.xlu0 %v2308_v14, %s2157_s6 }
  0xf2   : > { %v2848_v10 = vpop.permute.xlu1 %542  ;;  %v611_v9 = vpop.permute.xlu2 %610 }
  0xf3   : > { %v2850_v4 = vpop.permute.xlu0 %540 }
  0xf8   : > { %707 = vrot.lane.b32.xlu1 %v2320_v16, %s2157_s6  ;;  %709 = vrot.lane.b32.xlu2 %v2317_v15, %s2157_s6 }
  0xf9   : > { %705 = vrot.lane.b32.xlu0 %v2323_v17, %s2157_s6 }
  0xfa   : > { %v2858_v11 = vpop.permute.xlu1 %548  ;;  %v617_v12 = vpop.permute.xlu2 %616 }
  0xfb   : > { %v2860_v3 = vpop.permute.xlu0 %546 }
  0xfc   : > { %4044 = vst [vmem:[#allocation68_spill] sm:$0xff] %v2860_v3 }
 0x100   : > { %713 = vrot.lane.b32.xlu1 %v2335_v19, %s2157_s6  ;;  %715 = vrot.lane.b32.xlu2 %v2332_v18, %s2157_s6 }
 0x101   : > { %711 = vrot.lane.b32.xlu0 %v2338_v20, %s2157_s6 }
 0x102   : > { %v2868_v16 = vpop.permute.xlu1 %554  ;;  %v2870_v15 = vpop.permute.xlu2 %622 }
 0x103   : > { %4045 = vst [vmem:[#allocation69_spill] sm:$0xff] %v2870_v15  ;;  %v2872_v13 = vpop.permute.xlu0 %552 }
 0x104   : > { %4046 = vst [vmem:[#allocation70_spill] sm:$0xff] %v2872_v13 }
 0x108   : > { %719 = vrot.lane.b32.xlu1 %v2350_v23, %s2157_s6  ;;  %721 = vrot.lane.b32.xlu2 %v2347_v22, %s2157_s6 }
 0x109   : > { %717 = vrot.lane.b32.xlu0 %v2353_v24, %s2157_s6 }
 0x10a   : > { %v2880_v17 = vpop.permute.xlu1 %608  ;;  %v2882_v18 = vpop.permute.xlu2 %628 }
 0x10b   : > { %4047 = vst [vmem:[#allocation71_spill] sm:$0xff] %v2882_v18  ;;  %v2884_v3 = vpop.permute.xlu0 %606 }
 0x110   : > { %725 = vrot.lane.b32.xlu1 %v2751_v47, %s2157_s6  ;;  %727 = vrot.lane.b32.xlu2 %v2563_v26, %s2157_s6 }
 0x111   : > { %723 = vrot.lane.b32.xlu0 %v2748_v49, %s2157_s6 }
 0x112   : > { %v2892_v23 = vpop.permute.xlu1 %614  ;;  %v2894_v22 = vpop.permute.xlu2 %634 }
 0x113   : > { %v2896_v24 = vpop.permute.xlu0 %612 }
 0x118   : > { %759 = vrot.lane.b32.xlu1 %v2394_v37, %s2158_s7  ;;  %761 = vrot.lane.b32.xlu2 %v2390_v36, %s2158_s7 }
 0x119   : > { %757 = vrot.lane.b32.xlu0 %v2399_v38, %s2158_s7 }
 0x11a   : > { %v2904_v18 = vpop.permute.xlu1 %620  ;;  %v2906_v13 = vpop.permute.xlu2 %640 }
 0x11b   : > { %4048 = vst [vmem:[#allocation72_spill] sm:$0xff] %v2904_v18  ;;  %v2908_v15 = vpop.permute.xlu0 %618 }
 0x120   : > { %765 = vrot.lane.b32.xlu1 %v2416_v43, %s2158_s7  ;;  %767 = vrot.lane.b32.xlu2 %v2412_v42, %s2158_s7 }
 0x121   : > { %763 = vrot.lane.b32.xlu0 %v2421_v44, %s2158_s7 }
 0x122   : > { %v2916_v37 = vpop.permute.xlu1 %626  ;;  %v2918_v36 = vpop.permute.xlu2 %646 }
 0x123   : > { %4049 = vst [vmem:[#allocation73_spill] sm:$0xff] %v2916_v37  ;;  %v2920_v38 = vpop.permute.xlu0 %624 }
 0x124   : > { %4050 = vst [vmem:[#allocation74_spill] sm:$0xff] %v2920_v38  ;;  %v1059_v38 = vsel %vm1056_vm2, %v2437_v50, %v2544_v56 }
 0x128   : > { %771 = vrot.lane.b32.xlu1 %v2445_v52, %s2158_s7  ;;  %773 = vrot.lane.b32.xlu2 %v2441_v51, %s2158_s7  ;;  %v1084_v51 = vsel %vm1081_vm3, %v1059_v38, %v2684_v41 }
 0x129   : > { %769 = vrot.lane.b32.xlu0 %v2449_v53, %s2158_s7  ;;  %v1109_v52 = vsel %vm1106_vm4, %v1084_v51, %v611_v9 }
 0x12a   : > { %v2928_v43 = vpop.permute.xlu1 %632  ;;  %v2930_v42 = vpop.permute.xlu2 %652 }
 0x12b   : > { %v2932_v18 = vpop.permute.xlu0 %630 }
 0x130   : > { %777 = vrot.lane.b32.xlu1 %v2480_v63, %s2158_s7  ;;  %779 = vrot.lane.b32.xlu2 %v2476_v62, %s2158_s7  ;;  %v1062_v62 = vsel %vm1056_vm2, %v2590_v28, %v2495_v27 }
 0x131   : > { %775 = vrot.lane.b32.xlu0 %v2484_v1, %s2158_s7  ;;  %v1087_v51 = vsel %vm1081_vm3, %v1062_v62, %v2711_v48  ;;  %v4051_v48 = vrot.slane %v2248_v2, 7 }
 0x132   : > { %v2946_v53 = vpop.permute.xlu1 %638  ;;  %v686_v37 = vpop.permute.xlu2 %685 }
 0x133   : > { %v2949_v50 = vsel %vm1131_vm5, %v1109_v52, %v686_v37  ;;  %v2951_v56 = vpop.permute.xlu0 %636  ;;  %v1112_v52 = vsel %vm1106_vm4, %v1087_v51, %v617_v12  ;;  %v312_v38 = vsel %vm288_vm1, %v2745_v35, %v4051_v48  ;;  %v1058_v51 = vsel %vm1056_vm2, %v2472_v61, %v2579_v54 }
 0x134   : > { %v1083_v2 = vsel %vm1081_vm3, %v1058_v51, %v2776_v55 }
 0x135   : > { %v1108_v61 = vsel %vm1106_vm4, %v1083_v2, %v2880_v17  ;;  %v4055_v17 = vld [vmem:[#allocation28_spill] sm:$0xff]  ;;  %v4057_v2 = vld [vmem:[#allocation45_spill] sm:$0xff] }
 0x138   : > { %783 = vrot.lane.b32.xlu1 %v2503_v31, %s2158_s7  ;;  %785 = vrot.lane.b32.xlu2 %v2499_v30, %s2158_s7  ;;  %v369_v31 = vrot.slane %v2748_v49, 1 }
 0x139   : > { %781 = vrot.lane.b32.xlu0 %v2507_v32, %s2158_s7  ;;  %v370_v32 = vrot.slane %v2751_v47, 1 }
 0x13a   : > { %v2965_v41 = vpop.permute.xlu1 %644  ;;  %v692_v9 = vpop.permute.xlu2 %691 }
 0x13b   : > { %v2968_v37 = vsel %vm1131_vm5, %v1112_v52, %v692_v9  ;;  %v2970_v28 = vpop.permute.xlu0 %642  ;;  %v4052_v52 = vld [vmem:[#allocation57_spill] sm:$0xff]  ;;  %v4053_v9 = vld [vmem:[#allocation23_spill] sm:$0xff] }
 0x13c   : > { %v1057_v30 = vsel %vm1056_vm2, %v312_v38, %v4053_v9 }
 0x13d   : > { %v1082_v54 = vsel %vm1081_vm3, %v1057_v30, %v2778_v40  ;;  %v3024_v30 = vsel %vm337_vm0, %v369_v31, %v370_v32  ;;  %v4054_v40 = vld [vmem:[#allocation13_spill] sm:$0xff] }
 0x13e   : > { %v1107_v38 = vsel %vm1106_vm4, %v1082_v54, %v2884_v3  ;;  %v1061_v9 = vsel %vm1056_vm2, %v4055_v17, %v4054_v40  ;;  %v4056_v3 = vld [vmem:[#allocation25_spill] sm:$0xff] }
 0x13f   : > { %v1071_v54 = vsel %vm1056_vm2, %v4057_v2, %v4056_v3  ;;  %v1086_v40 = vsel %vm1081_vm3, %v1061_v9, %v2802_v5 }
 0x140   : > { %789 = vrot.lane.b32.xlu1 %v2526_v45, %s2158_s7  ;;  %793 = vrot.lane.b32.xlu2 %v2560_v21, %s2158_s7  ;;  %v1111_v17 = vsel %vm1106_vm4, %v1086_v40, %v2892_v23  ;;  %v4060_v23 = vld [vmem:[#allocation29_spill] sm:$0xff]  ;;  %v4064_v40 = vld [vmem:[#allocation35_spill] sm:$0xff] }
 0x141   : > { %787 = vrot.lane.b32.xlu0 %v2530_v46, %s2158_s7 }
 0x142   : > { %v2978_v62 = vpop.permute.xlu1 %650  ;;  %v2980_v12 = vpop.permute.xlu2 %697 }
 0x143   : > { %v2982_v27 = vpop.permute.xlu0 %648 }
 0x148   : > { %944 = vrot.lane.b32.xlu1 %v2748_v49, %s2159_s8  ;;  %857 = vrot.lane.b32.xlu2 %v4052_v52, %s2160_s9 }
 0x149   : > { %869 = vrot.lane.b32.xlu0 %v2792_v60, %s2160_s9 }
 0x14a   : > { %v684_v35 = vpop.permute.xlu1 %683  ;;  %v3006_v48 = vpop.permute.xlu2 %703 }
 0x14b   : > { %v3013_v55 = vsel %vm1131_vm5, %v1108_v61, %v684_v35  ;;  %v682_v60 = vpop.permute.xlu0 %681  ;;  %v4058_v61 = vld [vmem:[#allocation26_spill] sm:$0xff] }
 0x14c   : > { %v3016_v51 = vsel %vm1131_vm5, %v1107_v38, %v682_v60  ;;  %v4059_v35 = vld [vmem:[#allocation14_spill] sm:$0xff]  ;;  %v1096_v60 = vsel %vm1081_vm3, %v1071_v54, %v2800_v57 }
 0x14d   : > { %v1060_v38 = vsel %vm1056_vm2, %v4059_v35, %v4058_v61  ;;  %v3063_v35 = vld [vmem:[%s2239_s28 + $0xe8] sm:$0xff] }
 0x150   : > { %932 = vrot.lane.b32.xlu1 %v2338_v20, %s2159_s8  ;;  %1008 = vrot.lane.b32.xlu2 %v2530_v46, %s2161_s10  ;;  %v1085_v20 = vsel %vm1081_vm3, %v1060_v38, %v2804_v59  ;;  %v1121_v46 = vsel %vm1106_vm4, %v1096_v60, %v2894_v22  ;;  %v4061_v38 = vld [vmem:[#allocation50_spill] sm:$0xff]  ;;  %v4062_v60 = vld [vmem:[#allocation47_spill] sm:$0xff] }
 0x151   : > { %1020 = vrot.lane.b32.xlu0 %v3024_v30, %s2161_s10  ;;  %v1110_v57 = vsel %vm1106_vm4, %v1085_v20, %v2896_v24  ;;  %v1074_v22 = vsel %vm1056_vm2, %v4061_v38, %v4060_v23  ;;  %v4063_v24 = vld [vmem:[#allocation32_spill] sm:$0xff] }
 0x152   : > { %v690_v3 = vpop.permute.xlu1 %689  ;;  %v710_v61 = vpop.permute.xlu2 %709  ;;  %v1063_v20 = vsel %vm1056_vm2, %v4064_v40, %v4063_v24  ;;  %v4066_v40 = vld [vmem:[#allocation31_spill] sm:$0xff] }
 0x153   : > { %v3054_v54 = vsel %vm1131_vm5, %v1111_v17, %v690_v3  ;;  %v3057_v5 = vsel %vm1131_vm5, %v1121_v46, %v710_v61  ;;  %v688_v9 = vpop.permute.xlu0 %687  ;;  %v1099_v17 = vsel %vm1081_vm3, %v1074_v22, %v2812_v34  ;;  %v4065_v46 = vld [vmem:[#allocation24_spill] sm:$0xff]  ;;  %v3977_v3 = vrot.slane %v3063_v35, 7 }
 0x154   : > { %v3060_v59 = vsel %vm1131_vm5, %v1110_v57, %v688_v9  ;;  %v1088_v61 = vsel %vm1081_vm3, %v1063_v20, %v2816_v33  ;;  %v1124_v57 = vsel %vm1106_vm4, %v1099_v17, %v2906_v13  ;;  %v4067_v13 = vld [vmem:[#allocation36_spill] sm:$0xff]  ;;  %v4068_v20 = vld [vmem:[#allocation55_spill] sm:$0xff] }
 0x155   : > { %v1113_v23 = vsel %vm1106_vm4, %v1088_v61, %v2908_v15  ;;  %v382_v33 = vsel %vm288_vm1, %v3977_v3, %v4066_v40  ;;  %v1077_v17 = vsel %vm1056_vm2, %v4068_v20, %v4067_v13  ;;  %v4069_v40 = vld [vmem:[#allocation42_spill] sm:$0xff]  ;;  %v4070_v13 = vld [vmem:[#allocation43_spill] sm:$0xff] }
 0x156   : > { %v1102_v15 = vsel %vm1081_vm3, %v1077_v17, %v2824_v0  ;;  %v4071_v0 = vld [vmem:[#allocation46_spill] sm:$0xff] }
 0x157   : > { %v1127_v61 = vsel %vm1106_vm4, %v1102_v15, %v2918_v36  ;;  %v1070_v17 = vsel %vm1056_vm2, %v4071_v0, %v4070_v13  ;;  %v4073_v36 = vld [vmem:[#allocation44_spill] sm:$0xff] }
 0x158   : > { %845 = vrot.lane.b32.xlu1 %v4062_v60, %s2160_s9  ;;  %871 = vrot.lane.b32.xlu2 %v2782_v58, %s2160_s9  ;;  %v1069_v15 = vsel %vm1056_vm2, %v4062_v60, %v4073_v36  ;;  %v3144_v36 = vrot.slane %v2563_v26, 1 }
 0x159   : > { %795 = vrot.lane.b32.xlu0 %v4065_v46, %s2158_s7 }
 0x15a   : > { %v3084_v9 = vpop.permute.xlu1 %695  ;;  %v716_v58 = vpop.permute.xlu2 %715 }
 0x15b   : > { %v3089_v24 = vsel %vm1131_vm5, %v1124_v57, %v716_v58  ;;  %v694_v34 = vpop.permute.xlu0 %693 }
 0x15c   : > { %v3092_v22 = vsel %vm1131_vm5, %v1113_v23, %v694_v34 }
 0x160   : > { %833 = vrot.lane.b32.xlu1 %v382_v33, %s2160_s9  ;;  %946 = vrot.lane.b32.xlu2 %v2751_v47, %s2159_s8  ;;  %v1080_v33 = vsel %vm1056_vm2, %v2756_v39, %v4069_v40  ;;  %v1094_v40 = vsel %vm1081_vm3, %v1069_v15, %v2840_v7  ;;  %v4077_v15 = vld [vmem:[#allocation52_spill] sm:$0xff] }
 0x161   : > { %920 = vrot.lane.b32.xlu0 %v2308_v14, %s2159_s8  ;;  %v4072_v14 = vld [vmem:[#allocation56_spill] sm:$0xff] }
 0x162   : > { %v3111_v57 = vpop.permute.xlu1 %701  ;;  %v722_v58 = vpop.permute.xlu2 %721 }
 0x163   : > { %v3114_v23 = vsel %vm1131_vm5, %v1127_v61, %v722_v58  ;;  %v3116_v34 = vpop.permute.xlu0 %699  ;;  %v1095_v61 = vsel %vm1081_vm3, %v1070_v17, %v2836_v29  ;;  %v1105_v58 = vsel %vm1081_vm3, %v1080_v33, %v2838_v6  ;;  %v1119_v29 = vsel %vm1106_vm4, %v1094_v40, %v2932_v18  ;;  %v4074_v33 = vld [vmem:[#allocation48_spill] sm:$0xff]  ;;  %v4075_v17 = vld [vmem:[#allocation51_spill] sm:$0xff] }
 0x164   : > { %v1120_v13 = vsel %vm1106_vm4, %v1095_v61, %v2928_v43  ;;  %v1073_v18 = vsel %vm1056_vm2, %v4075_v17, %v4074_v33 }
 0x165   : > { %v1098_v47 = vsel %vm1081_vm3, %v1073_v18, %v2848_v10 }
 0x168   : > { %859 = vrot.lane.b32.xlu1 %v4072_v14, %s2160_s9  ;;  %908 = vrot.lane.b32.xlu2 %v2278_v8, %s2159_s8  ;;  %v1130_v8 = vsel %vm1106_vm4, %v1105_v58, %v2930_v42  ;;  %v3162_v42 = vsel %vm337_vm0, %v370_v32, %v3144_v36 }
 0x169   : > { %996 = vrot.lane.b32.xlu0 %v2484_v1, %s2161_s10 }
 0x16a   : > { %v708_v3 = vpop.permute.xlu1 %707  ;;  %v728_v60 = vpop.permute.xlu2 %727 }
 0x16b   : > { %v3149_v6 = vsel %vm1131_vm5, %v1120_v13, %v708_v3  ;;  %v3152_v1 = vsel %vm1131_vm5, %v1130_v8, %v728_v60  ;;  %v706_v7 = vpop.permute.xlu0 %705  ;;  %v4076_v3 = vld [vmem:[#allocation49_spill] sm:$0xff] }
 0x16c   : > { %v3155_v43 = vsel %vm1131_vm5, %v1119_v29, %v706_v7  ;;  %v1072_v61 = vsel %vm1056_vm2, %v4077_v15, %v4076_v3  ;;  %v4079_v29 = vld [vmem:[#allocation53_spill] sm:$0xff] }
 0x16d   : > { %v1097_v32 = vsel %vm1081_vm3, %v1072_v61, %v2850_v4  ;;  %v4078_v4 = vld [vmem:[#allocation21_spill] sm:$0xff] }
 0x170   : > { %934 = vrot.lane.b32.xlu1 %v2335_v19, %s2159_s8  ;;  %984 = vrot.lane.b32.xlu2 %v2421_v44, %s2161_s10  ;;  %v1123_v19 = vsel %vm1106_vm4, %v1098_v47, %v2946_v53  ;;  %v1122_v44 = vsel %vm1106_vm4, %v1097_v32, %v2951_v56  ;;  %v3199_v53 = vsel %vm337_vm0, %v4078_v4, %v369_v31  ;;  %v4081_v31 = vld [vmem:[#allocation68_spill] sm:$0xff]  ;;  %v4082_v47 = vld [vmem:[#allocation19_spill] sm:$0xff]  ;;  %v4083_v32 = vld [vmem:[#allocation33_spill] sm:$0xff] }
 0x171   : > { %1022 = vrot.lane.b32.xlu0 %v3162_v42, %s2161_s10  ;;  %v1076_v56 = vsel %vm1056_vm2, %v4072_v14, %v4079_v29  ;;  %v4089_v4 = vld [vmem:[#allocation60_spill] sm:$0xff]  ;;  %v4090_v29 = vld [vmem:[#allocation62_spill] sm:$0xff] }
 0x172   : > { %v714_v58 = vpop.permute.xlu1 %713  ;;  %v762_v40 = vpop.permute.xlu2 %761  ;;  %v1101_v49 = vsel %vm1081_vm3, %v1076_v56, %v2858_v11  ;;  %v1078_v56 = vsel %vm1056_vm2, %v4090_v29, %v4089_v4 }
 0x173   : > { %v3185_v13 = vsel %vm1131_vm5, %v1123_v19, %v714_v58  ;;  %v3189_v10 = vsel %vm1156_vm6, %v2949_v50, %v762_v40  ;;  %v712_v8 = vpop.permute.xlu0 %711  ;;  %v4080_v50 = vld [vmem:[#allocation54_spill] sm:$0xff]  ;;  %v1126_v14 = vsel %vm1106_vm4, %v1101_v49, %v2965_v41  ;;  %v1065_v41 = vsel %vm1056_vm2, %v4083_v32, %v4082_v47  ;;  %v4085_v58 = vld [vmem:[#allocation61_spill] sm:$0xff] }
 0x174   : > { %v3192_v60 = vsel %vm1131_vm5, %v1122_v44, %v712_v8  ;;  %v1075_v7 = vsel %vm1056_vm2, %v4052_v52, %v4080_v50  ;;  %v4084_v19 = vld [vmem:[#allocation58_spill] sm:$0xff]  ;;  %v4087_v8 = vld [vmem:[#allocation4_spill] sm:$0xff] }
 0x175   : > { %v1100_v33 = vsel %vm1081_vm3, %v1075_v7, %v4081_v31  ;;  %v1079_v40 = vsel %vm1056_vm2, %v4085_v58, %v4084_v19  ;;  %v4091_v7 = vld [vmem:[#allocation69_spill] sm:$0xff]  ;;  %v4092_v31 = vld [vmem:[#allocation64_spill] sm:$0xff] }
 0x176   : > { %v1104_v50 = vsel %vm1081_vm3, %v1079_v40, %v2868_v16 }
 0x178   : > { %797 = vrot.lane.b32.xlu1 %v3199_v53, %s2158_s7  ;;  %847 = vrot.lane.b32.xlu2 %v4071_v0, %s2160_s9  ;;  %v1125_v0 = vsel %vm1106_vm4, %v1100_v33, %v2970_v28  ;;  %v4086_v28 = vld [vmem:[#allocation59_spill] sm:$0xff]  ;;  %v4093_v33 = vld [vmem:[#allocation70_spill] sm:$0xff] }
 0x179   : > { %1010 = vrot.lane.b32.xlu0 %v2526_v45, %s2161_s10  ;;  %v1090_v44 = vsel %vm1081_vm3, %v1065_v41, %v4086_v28  ;;  %v3270_v28 = vld [vmem:[%s2239_s28 + $0xd8] sm:$0xff] }
 0x17a   : > { %v720_v18 = vpop.permute.xlu1 %719  ;;  %v768_v3 = vpop.permute.xlu2 %767  ;;  %v1115_v49 = vsel %vm1106_vm4, %v1090_v44, %v4091_v7  ;;  %v4095_v44 = vld [vmem:[#allocation39_spill] sm:$0xff] }
 0x17b   : > { %v3222_v61 = vsel %vm1131_vm5, %v1126_v14, %v720_v18  ;;  %v3226_v11 = vsel %vm1156_vm6, %v2968_v37, %v768_v3  ;;  %v718_v52 = vpop.permute.xlu0 %717  ;;  %v4088_v37 = vld [vmem:[#allocation34_spill] sm:$0xff]  ;;  %v1103_v14 = vsel %vm1081_vm3, %v1078_v56, %v4093_v33  ;;  %v1129_v18 = vsel %vm1106_vm4, %v1104_v50, %v2978_v62 }
 0x17c   : > { %v3229_v45 = vsel %vm1131_vm5, %v1125_v0, %v718_v52  ;;  %v1140_v3 = vsel %vm1131_vm5, %v1115_v49, %v2980_v12  ;;  %v1128_v16 = vsel %vm1106_vm4, %v1103_v14, %v2982_v27  ;;  %v4094_v62 = vld [vmem:[#allocation22_spill] sm:$0xff]  ;;  %v4097_v27 = vld [vmem:[#allocation71_spill] sm:$0xff]  ;;  %v383_v50 = vrot.slane %v3270_v28, 1 }
 0x17d   : > { %v1068_v12 = vsel %vm1056_vm2, %v4095_v44, %v4094_v62 }
 0x180   : > { %922 = vrot.lane.b32.xlu1 %v4087_v8, %s2159_s8  ;;  %835 = vrot.lane.b32.xlu2 %v4088_v37, %s2160_s9  ;;  %v4096_v8 = vld [vmem:[#allocation63_spill] sm:$0xff] }
 0x181   : > { %873 = vrot.lane.b32.xlu0 %v4092_v31, %s2160_s9  ;;  %v1093_v4 = vsel %vm1081_vm3, %v1068_v12, %v4096_v8  ;;  %v4101_v12 = vld [vmem:[#allocation65_spill] sm:$0xff] }
 0x182   : > { %v726_v0 = vpop.permute.xlu1 %725  ;;  %v774_v52 = vpop.permute.xlu2 %773  ;;  %v1118_v56 = vsel %vm1106_vm4, %v1093_v4, %v4097_v27  ;;  %v4102_v4 = vld [vmem:[#allocation20_spill] sm:$0xff]  ;;  %v4104_v27 = vld [vmem:[#allocation9_spill] sm:$0xff] }
 0x183   : > { %v3261_v47 = vsel %vm1131_vm5, %v1129_v18, %v726_v0  ;;  %v3264_v41 = vsel %vm1156_vm6, %v1140_v3, %v774_v52  ;;  %v724_v19 = vpop.permute.xlu0 %723  ;;  %v1143_v7 = vsel %vm1131_vm5, %v1118_v56, %v3006_v48  ;;  %v4098_v48 = vld [vmem:[#allocation5_spill] sm:$0xff] }
 0x184   : > { %v3267_v40 = vsel %vm1131_vm5, %v1128_v16, %v724_v19  ;;  %v4100_v19 = vld [vmem:[#allocation30_spill] sm:$0xff] }
 0x185   : > { %v1064_v62 = vsel %vm1056_vm2, %v4088_v37, %v4100_v19  ;;  %v4109_v19 = vld [vmem:[#allocation41_spill] sm:$0xff] }
 0x186   : > { %v1089_v8 = vsel %vm1081_vm3, %v1064_v62, %v4101_v12  ;;  %v4110_v12 = vld [vmem:[#allocation66_spill] sm:$0xff] }
 0x188   : > { %998 = vrot.lane.b32.xlu1 %v2480_v63, %s2161_s10  ;;  %861 = vrot.lane.b32.xlu2 %v4068_v20, %s2160_s9 }
 0x189   : > { %948 = vrot.lane.b32.xlu0 %v2563_v26, %s2159_s8  ;;  %v388_v26 = vsel %vm337_vm0, %v3144_v36, %v383_v50 }
 0x18a   : > { %v760_v49 = vpop.permute.xlu1 %759  ;;  %v780_v31 = vpop.permute.xlu2 %779 }
 0x18b   : > { %v3290_v33 = vsel %vm1156_vm6, %v3013_v55, %v760_v49  ;;  %v3293_v63 = vsel %vm1156_vm6, %v1143_v7, %v780_v31  ;;  %v758_v20 = vpop.permute.xlu0 %757  ;;  %v4099_v55 = vld [vmem:[#allocation2_spill] sm:$0xff] }
 0x18c   : > { %v3297_v14 = vsel %vm1156_vm6, %v3016_v51, %v758_v20  ;;  %v1259_v20 = vld [vmem:[%s3915_s1 + $0x18] sm:$0xff] }
 0x190   : > { %1024 = vrot.lane.b32.xlu1 %v388_v26, %s2161_s10  ;;  %936 = vrot.lane.b32.xlu2 %v4098_v48, %s2159_s8  ;;  %v1258_v48 = vld [vmem:[%s3915_s1 + $0x10] sm:$0xff] }
 0x191   : > { %910 = vrot.lane.b32.xlu0 %v4099_v55, %s2159_s8  ;;  %v4106_v55 = vld [vmem:[#allocation37_spill] sm:$0xff] }
 0x192   : > { %v766_v18 = vpop.permute.xlu1 %765  ;;  %v786_v3 = vpop.permute.xlu2 %785 }
 0x193   : > { %v3311_v51 = vsel %vm1156_vm6, %v3054_v54, %v766_v18  ;;  %v3315_v0 = vsel %vm1156_vm6, %v3057_v5, %v786_v3  ;;  %v764_v52 = vpop.permute.xlu0 %763  ;;  %v4103_v54 = vld [vmem:[#allocation72_spill] sm:$0xff] }
 0x194   : > { %v3319_v16 = vsel %vm1156_vm6, %v3060_v59, %v764_v52  ;;  %v1114_v5 = vsel %vm1106_vm4, %v1089_v8, %v4103_v54  ;;  %v376_v59 = vrot.slane %v3270_v28, 7  ;;  %v4107_v18 = vld [vmem:[#allocation40_spill] sm:$0xff]  ;;  %v4108_v52 = vld [vmem:[#allocation38_spill] sm:$0xff]  ;;  %v4111_v54 = vld [vmem:[#allocation3_spill] sm:$0xff] }
 0x195   : > { %v1139_v37 = vsel %vm1131_vm5, %v1114_v5, %v3084_v9  ;;  %v4105_v9 = vld [vmem:[#allocation27_spill] sm:$0xff]  ;;  %v1067_v3 = vsel %vm1056_vm2, %v4107_v18, %v4106_v55  ;;  %v1066_v62 = vsel %vm1056_vm2, %v4109_v19, %v4108_v52  ;;  %vm1885_vm2 = vcmask 588800  }
 0x196   : > { %v381_v26 = vsel %vm288_vm1, %v4105_v9, %v376_v59  ;;  %v1092_v8 = vsel %vm1081_vm3, %v1067_v3, %v4110_v12  ;;  %v4112_v5 = vld [vmem:[#allocation67_spill] sm:$0xff]  ;;  %v1256_v12 = vld [vmem:[%s3915_s1] sm:$0xff] }
 0x198   : > { %1012 = vrot.lane.b32.xlu1 %v4102_v4, %s2161_s10  ;;  %799 = vrot.lane.b32.xlu2 %v3024_v30, %s2158_s7  ;;  %v1260_v30 = vld [vmem:[%s3915_s1 + $0x20] sm:$0xf] }
 0x199   : > { %986 = vrot.lane.b32.xlu0 %v4104_v27, %s2161_s10  ;;  %2026 = vmatpush.msk.msra.mxu3 %vm1334_vm7, %v1260_v30  ;;  %v1091_v27 = vsel %vm1081_vm3, %v1066_v62, %v4112_v5 }
 0x19a   : > { %v772_v56 = vpop.permute.xlu1 %771  ;;  %v3337_v7 = vpop.permute.xlu2 %793  ;;  %2025 = vmatpush.msk.msra.mxu2 %vm1334_vm7, %v1260_v30  ;;  %1997 = vmatpush.msk.msra.mxu0 %vm1334_vm7, %v1260_v30 }
 0x19b   : > { %v3340_v49 = vsel %vm1156_vm6, %v1139_v37, %v772_v56  ;;  %v3342_v31 = vpop.permute.xlu0 %769  ;;  %2024 = vmatpush.msk.msra.mxu1 %vm1334_vm7, %v1260_v30  ;;  %2029 = vmatpush.msra.mxu3 %v1259_v20  ;;  %v4113_v37 = vld [vmem:[#allocation73_spill] sm:$0xff]  ;;  %v1257_v30 = vld [vmem:[%s3915_s1 + $0x8] sm:$0xff]  ;;  %vm1895_vm7 = vcmask 916480  }
 0x19c   : > { %2028 = vmatpush.msra.mxu2 %v1259_v20  ;;  %1350 = vmatpush.msra.mxu0 %v1259_v20  ;;  %v1117_v56 = vsel %vm1106_vm4, %v1092_v8, %v4113_v37  ;;  %v3394_v8 = vld [vmem:[%s2239_s28 + $0xe0] sm:$0xff] }
 0x19d   : > { %2027 = vmatpush.msra.mxu1 %v1259_v20  ;;  %2032 = vmatpush.msra.mxu3 %v1258_v48  ;;  %v4114_v20 = vld [vmem:[#allocation74_spill] sm:$0xff] }
 0x19e   : > { %v1116_v9 = vsel %vm1106_vm4, %v1091_v27, %v4114_v20  ;;  %2031 = vmatpush.msra.mxu2 %v1258_v48  ;;  %1351 = vmatpush.msra.mxu0 %v1258_v48  ;;  %vm1889_vm4 = vcmask 719872  }
 0x19f   : > { %v1141_v52 = vsel %vm1131_vm5, %v1116_v9, %v3116_v34  ;;  %2035 = vmatpush.msra.mxu3 %v1257_v30  ;;  %2030 = vmatpush.msra.mxu1 %v1258_v48  ;;  %v4115_v34 = vld [vmem:[#allocation15_spill] sm:$0xff]  ;;  %v384_v48 = vrot.slane %v3394_v8, 1 }
 0x1a0   : > { %875 = vrot.lane.b32.xlu1 %v381_v26, %s2160_s9  ;;  %924 = vrot.lane.b32.xlu2 %v4111_v54, %s2159_s8  ;;  %v1142_v26 = vsel %vm1131_vm5, %v1117_v56, %v3111_v57  ;;  %v2104_v56 = vld [vmem:[%s2239_s28 + $0x40] sm:$0xff] }
 0x1a1   : > { %849 = vrot.lane.b32.xlu0 %v4057_v2, %s2160_s9  ;;  %2034 = vmatpush.msra.mxu2 %v1257_v30  ;;  %v387_v37 = vsel %vm337_vm0, %v383_v50, %v384_v48  ;;  %v4116_v50 = vld [vmem:[#allocation8_spill] sm:$0xff] }
 0x1a2   : > { %v778_v55 = vpop.permute.xlu1 %777  ;;  %v858_v3 = vpop.permute.xlu2 %857  ;;  %1352 = vmatpush.msra.mxu0 %v1257_v30  ;;  %2038 = vmatpush.msra.mxu3 %v1256_v12 }
 0x1a3   : > { %v3385_v2 = vsel %vm1156_vm6, %v1142_v26, %v778_v55  ;;  %v776_v62 = vpop.permute.xlu0 %775  ;;  %2033 = vmatpush.msra.mxu1 %v1257_v30  ;;  %2037 = vmatpush.msra.mxu2 %v1256_v12  ;;  %v2105_v55 = vld [vmem:[%s2239_s28 + $0xa8] sm:$0xff] }
 0x1a4   : > { %v3391_v57 = vsel %vm1156_vm6, %v1141_v52, %v776_v62  ;;  %1353 = vmatpush.msra.mxu0 %v1256_v12 }
 0x1a5   : > { %2036 = vmatpush.msra.mxu1 %v1256_v12 }
 0x1a8   : > { %950 = vrot.lane.b32.xlu1 %v3270_v28, %s2159_s8  ;;  %1000 = vrot.lane.b32.xlu2 %v4115_v34, %s2161_s10 }
 0x1a9   : > { %837 = vrot.lane.b32.xlu0 %v4083_v32, %s2160_s9 }
 0x1aa   : > { %v3403_v54 = vpop.permute.xlu1 %783  ;;  %v1009_v5 = vpop.permute.xlu2 %1008 }
 0x1ab   : > { %v782_v27 = vpop.permute.xlu0 %781 }
 0x1ac   : > { %v1169_v12 = vsel %vm1156_vm6, %v3155_v43, %v782_v27 }
 0x1b0   : > { %912 = vrot.lane.b32.xlu1 %v2104_v56, %s2159_s8  ;;  %1026 = vrot.lane.b32.xlu2 %v387_v37, %s2161_s10 }
 0x1b1   : > { %863 = vrot.lane.b32.xlu0 %v4090_v29, %s2160_s9  ;;  %v377_v29 = vrot.slane %v3394_v8, 7 }
 0x1b2   : > { %v790_v32 = vpop.permute.xlu1 %789  ;;  %v3416_v30 = vpop.permute.xlu2 %871 }
 0x1b3   : > { %v3420_v20 = vsel %vm1156_vm6, %v3185_v13, %v790_v32  ;;  %v788_v9 = vpop.permute.xlu0 %787 }
 0x1b4   : > { %v3424_v26 = vsel %vm1156_vm6, %v3192_v60, %v788_v9  ;;  %v380_v60 = vsel %vm288_vm1, %v376_v59, %v377_v29  ;;  %v4117_v9 = vld [vmem:[#allocation18_spill] sm:$0xff] }
 0x1b8   : > { %988 = vrot.lane.b32.xlu1 %v4116_v50, %s2161_s10  ;;  %1014 = vrot.lane.b32.xlu2 %v2560_v21, %s2161_s10  ;;  %v1175_v21 = vsel %vm1156_vm6, %v3229_v45, %v3337_v7  ;;  %v1194_v45 = vsel %vm1181_vm8, %v1169_v12, %v858_v3  ;;  %v2108_v12 = vld [vmem:[%s2239_s28 + $0xb0] sm:$0xff] }
 0x1b9   : > { %938 = vrot.lane.b32.xlu0 %v2105_v55, %s2159_s8  ;;  %v385_v55 = vrot.slane %v3063_v35, 1 }
 0x1ba   : > { %v945_v52 = vpop.permute.xlu1 %944  ;;  %v3433_v62 = vpop.permute.xlu2 %946 }
 0x1bb   : > { %v870_v13 = vpop.permute.xlu0 %869 }
 0x1bc   : > { %v1200_v34 = vsel %vm1181_vm8, %v1175_v21, %v870_v13 }
 0x1bd   : > { %v1225_v27 = vsel %vm1206_vm9, %v1200_v34, %v945_v52  ;;  %v4118_v34 = vld [vmem:[#allocation12_spill] sm:$0xff] }
 0x1c0   : > { %851 = vrot.lane.b32.xlu1 %v4077_v15, %s2160_s9  ;;  %877 = vrot.lane.b32.xlu2 %v380_v60, %s2160_s9 }
 0x1c1   : > { %801 = vrot.lane.b32.xlu0 %v3162_v42, %s2158_s7  ;;  %v2106_v42 = vld [vmem:[%s2239_s28 + $0x78] sm:$0xff] }
 0x1c2   : > { %v933_v28 = vpop.permute.xlu1 %932  ;;  %v909_v59 = vpop.permute.xlu2 %908 }
 0x1c3   : > { %v1219_v43 = vsel %vm1206_vm9, %v1194_v45, %v933_v28  ;;  %v1021_v7 = vpop.permute.xlu0 %1020 }
 0x1c4   : > { %v1250_v15 = vsel %vm1231_vm10, %v1225_v27, %v1021_v7  ;;  %v1244_v37 = vsel %vm1231_vm10, %v1219_v43, %v1009_v5  ;;  %v2107_v5 = vld [vmem:[%s2239_s28 + $0x48] sm:$0xff] }
 0x1c5   : > { %2016 = vmatmul.msk.f32.vlgmr.msra.gmra.mxu3 %vm1261_vm11, %v1250_v15  ;;  %2010 = vmatmul.msk.f32.vlgmr.msra.gmra.mxu2 %vm1261_vm11, %v1244_v37  ;;  %v4119_v15 = vld [vmem:[#allocation6_spill] sm:$0xff] }
 0x1c8   : > { %839 = vrot.lane.b32.xlu1 %v4109_v19, %s2160_s9  ;;  %952 = vrot.lane.b32.xlu2 %v3394_v8, %s2159_s8 }
 0x1c9   : > { %926 = vrot.lane.b32.xlu0 %v2106_v42, %s2159_s8 }
 0x1ca   : > { %v846_v3 = vpop.permute.xlu1 %845  ;;  %v985_v56 = vpop.permute.xlu2 %984 }
 0x1cb   : > { %v796_v32 = vpop.permute.xlu0 %795 }
 0x1cc   : > { %v1176_v27 = vsel %vm1156_vm6, %v3222_v61, %v796_v32 }
 0x1d0   : > { %865 = vrot.lane.b32.xlu1 %v4085_v58, %s2160_s9  ;;  %914 = vrot.lane.b32.xlu2 %v2107_v5, %s2159_s8  ;;  %v386_v58 = vsel %vm337_vm0, %v384_v48, %v385_v55 }
 0x1d1   : > { %1002 = vrot.lane.b32.xlu0 %v4117_v9, %s2161_s10 }
 0x1d2   : > { %v834_v19 = vpop.permute.xlu1 %833  ;;  %v848_v50 = vpop.permute.xlu2 %847 }
 0x1d3   : > { %v1182_v52 = vsel %vm1181_vm8, %v3297_v14, %v834_v19  ;;  %v921_v13 = vpop.permute.xlu0 %920  ;;  %v1163_v14 = vsel %vm1156_vm6, %v3092_v22, %v3342_v31  ;;  %v375_v22 = vsel %vm337_vm0, %v3144_v36, %v4119_v15  ;;  %v1201_v31 = vsel %vm1181_vm8, %v1176_v27, %v3416_v30  ;;  %v2109_v30 = vld [vmem:[%s2239_s28 + $0x80] sm:$0xff] }
 0x1d4   : > { %v1207_v60 = vsel %vm1206_vm9, %v1182_v52, %v909_v59  ;;  %v1188_v28 = vsel %vm1181_vm8, %v1163_v14, %v846_v3  ;;  %v1226_v3 = vsel %vm1206_vm9, %v1201_v31, %v3433_v62  ;;  %v4120_v36 = vrot.slane %v3063_v35, 7  ;;  %v4122_v52 = vld [vmem:[#allocation7_spill] sm:$0xff] }
 0x1d5   : > { %v1232_v21 = vsel %vm1231_vm10, %v1207_v60, %v985_v56  ;;  %v1213_v43 = vsel %vm1206_vm9, %v1188_v28, %v921_v13  ;;  %v389_v13 = vsel %vm337_vm0, %v385_v55, %v4122_v52  ;;  %v2110_v60 = vld [vmem:[%s2239_s28 + $0x50] sm:$0xff]  ;;  %vm1881_vm0 = vcmask 457728  }
 0x1d6   : > { %1998 = vmatmul.msk.f32.vlgmr.msra.gmra.mxu0 %vm1261_vm11, %v1232_v21 }
 0x1d8   : > { %940 = vrot.lane.b32.xlu1 %v2108_v12, %s2159_s8  ;;  %990 = vrot.lane.b32.xlu2 %v4118_v34, %s2161_s10  ;;  %v4123_v34 = vld [vmem:[#allocation11_spill] sm:$0xff] }
 0x1d9   : > { %1028 = vrot.lane.b32.xlu0 %v386_v58, %s2161_s10 }
 0x1da   : > { %v860_v45 = vpop.permute.xlu1 %859  ;;  %v3490_v59 = vpop.permute.xlu2 %835 }
 0x1db   : > { %v997_v48 = vpop.permute.xlu0 %996 }
 0x1dc   : > { %v1238_v7 = vsel %vm1231_vm10, %v1213_v43, %v997_v48  ;;  %v1183_v48 = vsel %vm1181_vm8, %v3290_v33, %v3490_v59  ;;  %v4124_v33 = vld [vmem:[#allocation10_spill] sm:$0xff] }
 0x1dd   : > { %2004 = vmatmul.msk.f32.vlgmr.msra.gmra.mxu1 %vm1261_vm11, %v1238_v7 }
 0x1e0   : > { %803 = vrot.lane.b32.xlu1 %v375_v22, %s2158_s7  ;;  %853 = vrot.lane.b32.xlu2 %v4075_v17, %s2160_s9  ;;  %v379_v17 = vsel %vm288_vm1, %v377_v29, %v4120_v36  ;;  %vm1883_vm1 = vcmask 523264  }
 0x1e1   : > { %1016 = vrot.lane.b32.xlu0 %v4065_v46, %s2161_s10  ;;  %v1170_v46 = vsel %vm1156_vm6, %v3149_v6, %v3403_v54 }
 0x1e2   : > { %v935_v37 = vpop.permute.xlu1 %934  ;;  %v862_v61 = vpop.permute.xlu2 %861  ;;  %v1195_v62 = vsel %vm1181_vm8, %v1170_v46, %v860_v45 }
 0x1e3   : > { %v1023_v42 = vpop.permute.xlu0 %1022  ;;  %v1220_v5 = vsel %vm1206_vm9, %v1195_v62, %v935_v37 }
 0x1e4   : > { %v1251_v56 = vsel %vm1231_vm10, %v1226_v3, %v1023_v42 }
 0x1e5   : > { %2017 = vmatmul.msk.f32.gmra.mxu3 %vm1261_vm11, %v1251_v56 }
 0x1e8   : > { %928 = vrot.lane.b32.xlu1 %v2109_v30, %s2159_s8  ;;  %791 = vrot.lane.b32.xlu2 %v4102_v4, %s2158_s7  ;;  %v4121_v4 = vld [vmem:[#allocation17_spill] sm:$0xff] }
 0x1e9   : > { %879 = vrot.lane.b32.xlu0 %v379_v17, %s2160_s9 }
 0x1ea   : > { %v798_v32 = vpop.permute.xlu1 %797  ;;  %v937_v8 = vpop.permute.xlu2 %936 }
 0x1eb   : > { %v1011_v29 = vpop.permute.xlu0 %1010  ;;  %v1177_v55 = vsel %vm1156_vm6, %v3114_v23, %v798_v32  ;;  %v2112_v23 = vld [vmem:[%s2239_s28 + $0x88] sm:$0xff] }
 0x1ec   : > { %v1245_v9 = vsel %vm1231_vm10, %v1220_v5, %v1011_v29 }
 0x1ed   : > { %2011 = vmatmul.msk.f32.gmra.mxu2 %vm1261_vm11, %v1245_v9 }
 0x1f0   : > { %954 = vrot.lane.b32.xlu1 %v3063_v35, %s2159_s8  ;;  %1004 = vrot.lane.b32.xlu2 %v4121_v4, %s2161_s10  ;;  %v1189_v35 = vsel %vm1181_vm8, %v3340_v49, %v848_v50  ;;  %v2111_v49 = vld [vmem:[%s2239_s28 + $0xb8] sm:$0xff] }
 0x1f1   : > { %841 = vrot.lane.b32.xlu0 %v4107_v18, %s2160_s9 }
 0x1f2   : > { %v923_v6 = vpop.permute.xlu1 %922  ;;  %v800_v54 = vpop.permute.xlu2 %799 }
 0x1f3   : > { %v874_v19 = vpop.permute.xlu0 %873  ;;  %v1214_v18 = vsel %vm1206_vm9, %v1189_v35, %v923_v6  ;;  %v1178_v17 = vsel %vm1156_vm6, %v3267_v40, %v800_v54 }
 0x1f8   : > { %916 = vrot.lane.b32.xlu1 %v2110_v60, %s2159_s8  ;;  %1030 = vrot.lane.b32.xlu2 %v389_v13, %s2161_s10 }
 0x1f9   : > { %867 = vrot.lane.b32.xlu0 %v2756_v39, %s2160_s9  ;;  %v1202_v39 = vsel %vm1181_vm8, %v1177_v55, %v874_v19 }
 0x1fa   : > { %v999_v21 = vpop.permute.xlu1 %998  ;;  %v925_v58 = vpop.permute.xlu2 %924 }
 0x1fb   : > { %v949_v12 = vpop.permute.xlu0 %948  ;;  %v1239_v25 = vsel %vm1231_vm10, %v1214_v18, %v999_v21 }
 0x1fc   : > { %2005 = vmatmul.msk.f32.gmra.mxu1 %vm1261_vm11, %v1239_v25  ;;  %v1227_v50 = vsel %vm1206_vm9, %v1202_v39, %v949_v12 }
 0x200   : > { %992 = vrot.lane.b32.xlu1 %v4123_v34, %s2161_s10  ;;  %1018 = vrot.lane.b32.xlu2 %v3199_v53, %s2161_s10  ;;  %v1196_v53 = vsel %vm1181_vm8, %v3315_v0, %v862_v61  ;;  %v4125_v0 = vld [vmem:[#allocation16_spill] sm:$0xff] }
 0x201   : > { %942 = vrot.lane.b32.xlu0 %v2111_v49, %s2159_s8  ;;  %v1221_v7 = vsel %vm1206_vm9, %v1196_v53, %v937_v8 }
 0x202   : > { %v1025_v14 = vpop.permute.xlu1 %1024  ;;  %v1001_v28 = vpop.permute.xlu2 %1000 }
 0x203   : > { %v911_v45 = vpop.permute.xlu0 %910  ;;  %v1252_v43 = vsel %vm1231_vm10, %v1227_v50, %v1025_v14 }
 0x204   : > { %2018 = vmatmul.msk.f32.gmra.mxu3 %vm1261_vm11, %v1252_v43  ;;  %v1208_v22 = vsel %vm1206_vm9, %v1183_v48, %v911_v45 }
 0x208   : > { %930 = vrot.lane.b32.xlu1 %v2112_v23, %s2159_s8  ;;  %843 = vrot.lane.b32.xlu2 %v4095_v44, %s2160_s9 }
 0x209   : > { %855 = vrot.lane.b32.xlu0 %v4061_v38, %s2160_s9  ;;  %v2113_v38 = vld [vmem:[%s2239_s28 + $0x58] sm:$0xff] }
 0x20a   : > { %v1013_v27 = vpop.permute.xlu1 %1012  ;;  %v1027_v15 = vpop.permute.xlu2 %1026 }
 0x20b   : > { %v987_v31 = vpop.permute.xlu0 %986  ;;  %v1246_v37 = vsel %vm1231_vm10, %v1221_v7, %v1013_v27 }
 0x20c   : > { %v1233_v44 = vsel %vm1231_vm10, %v1208_v22, %v987_v31  ;;  %2012 = vmatmul.msk.f32.gmra.mxu2 %vm1261_vm11, %v1246_v37 }
 0x20d   : > { %1999 = vmatmul.msk.f32.gmra.mxu0 %vm1261_vm11, %v1233_v44 }
 0x210   : > { %918 = vrot.lane.b32.xlu1 %v2113_v38, %s2159_s8  ;;  %994 = vrot.lane.b32.xlu2 %v4124_v33, %s2161_s10  ;;  %s2166_s8 = smov 56  }
 0x211   : > { %1006 = vrot.lane.b32.xlu0 %v4125_v0, %s2161_s10 }
 0x212   : > { %v876_v59 = vpop.permute.xlu1 %875  ;;  %v1015_v61 = vpop.permute.xlu2 %1014 }
 0x213   : > { %v850_v42 = vpop.permute.xlu0 %849  ;;  %v1203_v30 = vsel %vm1181_vm8, %v1178_v17, %v876_v59 }
 0x214   : > { %v1190_v3 = vsel %vm1181_vm8, %v3264_v41, %v850_v42 }
 0x215   : > { %v1215_v56 = vsel %vm1206_vm9, %v1190_v3, %v925_v58 }
 0x216   : > { %v1240_v36 = vsel %vm1231_vm10, %v1215_v56, %v1001_v28 }
 0x217   : > { %2006 = vmatmul.msk.f32.gmra.mxu1 %vm1261_vm11, %v1240_v36 }
 0x21a   : > { %v951_v46 = vpop.permute.xlu1 %950  ;;  %v878_v5 = vpop.permute.xlu2 %877 }
 0x21b   : > { %v1228_v62 = vsel %vm1206_vm9, %v1203_v30, %v951_v46  ;;  %v838_v32 = vpop.permute.xlu0 %837 }
 0x21c   : > { %v1253_v8 = vsel %vm1231_vm10, %v1228_v62, %v1027_v15  ;;  %v1184_v4 = vsel %vm1181_vm8, %v3189_v10, %v838_v32 }
 0x21d   : > { %2019 = vmatmul.msk.f32.gmra.mxu3 %vm1261_vm11, %v1253_v8 }
 0x222   : > { %v913_v41 = vpop.permute.xlu1 %912  ;;  %v953_v9 = vpop.permute.xlu2 %952 }
 0x223   : > { %v864_v29 = vpop.permute.xlu0 %863  ;;  %v1209_v6 = vsel %vm1206_vm9, %v1184_v4, %v913_v41 }
 0x224   : > { %v1197_v54 = vsel %vm1181_vm8, %v3424_v26, %v864_v29 }
 0x22a   : > { %v989_v40 = vpop.permute.xlu1 %988  ;;  %v915_v35 = vpop.permute.xlu2 %914 }
 0x22b   : > { %v939_v19 = vpop.permute.xlu0 %938  ;;  %v1234_v52 = vsel %vm1231_vm10, %v1209_v6, %v989_v40 }
 0x22c   : > { %v1222_v13 = vsel %vm1206_vm9, %v1197_v54, %v939_v19  ;;  %2000 = vmatmul.msk.f32.gmra.mxu0 %vm1261_vm11, %v1234_v52 }
 0x22d   : > { %v1247_v60 = vsel %vm1231_vm10, %v1222_v13, %v1015_v61 }
 0x22e   : > { %2013 = vmatmul.msk.f32.gmra.mxu2 %vm1261_vm11, %v1247_v60 }
 0x232   : > { %v852_v18 = vpop.permute.xlu1 %851  ;;  %v991_v58 = vpop.permute.xlu2 %990 }
 0x233   : > { %v802_v10 = vpop.permute.xlu0 %801  ;;  %v1191_v34 = vsel %vm1181_vm8, %v3391_v57, %v852_v18 }
 0x234   : > { %v1179_v28 = vsel %vm1156_vm6, %v3261_v47, %v802_v10 }
 0x235   : > { %v1204_v45 = vsel %vm1181_vm8, %v1179_v28, %v878_v5 }
 0x236   : > { %v1229_v53 = vsel %vm1206_vm9, %v1204_v45, %v953_v9 }
 0x23a   : > { %v840_v21 = vpop.permute.xlu1 %839 }
 0x23b   : > { %v1185_v12 = vsel %vm1181_vm8, %v3319_v16, %v840_v21  ;;  %v927_v26 = vpop.permute.xlu0 %926  ;;  %v854_v16 = vpop.permute.xlu2 %853 }
 0x23c   : > { %v1210_v25 = vsel %vm1206_vm9, %v1185_v12, %v915_v35  ;;  %v1216_v49 = vsel %vm1206_vm9, %v1191_v34, %v927_v26  ;;  %v1192_v37 = vsel %vm1181_vm8, %v3385_v2, %v854_v16 }
 0x23d   : > { %v1235_v55 = vsel %vm1231_vm10, %v1210_v25, %v991_v58 }
 0x23e   : > { %2001 = vmatmul.msk.f32.gmra.mxu0 %vm1261_vm11, %v1235_v55  ;;  %v3663_v55 = vld [vmem:[%s3916_s2] ss:$0 sm:$0xff] }
 0x242   : > { %v866_v39 = vpop.permute.xlu1 %865 }
 0x243   : > { %v1003_v50 = vpop.permute.xlu0 %1002  ;;  %v792_v48 = vpop.permute.xlu2 %791  ;;  %v1198_v7 = vsel %vm1181_vm8, %v3420_v20, %v866_v39 }
 0x244   : > { %v1241_v14 = vsel %vm1231_vm10, %v1216_v49, %v1003_v50 }
 0x245   : > { %2007 = vmatmul.msk.f32.gmra.mxu1 %vm1261_vm11, %v1241_v14  ;;  %v3670_v14 = vld [vmem:[%s3917_s3] ss:$0 sm:$0xff] }
 0x248   : > { %v1409_v10 = vpop.f32.mrf.mxu3 }
 0x249   : > { %v1449_v50 = vmul.f32 %v3663_v55, %v1409_v10 }
 0x24a   : > { %v941_v43 = vpop.permute.xlu1 %940 }
 0x24b   : > { %v1029_v23 = vpop.permute.xlu0 %1028  ;;  %v1223_v47 = vsel %vm1206_vm9, %v1198_v7, %v941_v43  ;;  %v1005_v31 = vpop.permute.xlu2 %1004 }
 0x24c   : > { %v1254_v57 = vsel %vm1231_vm10, %v1229_v53, %v1029_v23  ;;  %v1477_v23 = vadd.f32 %v3670_v14, %v1449_v50 }
 0x24d   : > { %2020 = vmatmul.msk.f32.gmra.mxu3 %vm1261_vm11, %v1254_v57 }
 0x252   : > { %v804_v27 = vpop.permute.xlu1 %803 }
 0x253   : > { %v1017_v15 = vpop.permute.xlu0 %1016  ;;  %v1180_v20 = vsel %vm1156_vm6, %v3152_v1, %v804_v27  ;;  %v1031_v42 = vpop.permute.xlu2 %1030  ;;  %v1174_v1 = vsel %vm1156_vm6, %v3089_v24, %v792_v48  ;;  %vm1893_vm6 = vcmask 850944  }
 0x254   : > { %v1248_v22 = vsel %vm1231_vm10, %v1223_v47, %v1017_v15  ;;  %v1355_v34 = vpop.f32.mrf.mxu0  ;;  %v1501_v47 = vmax.f32 %v1477_v23, 0.0 }
 0x255   : > { %2014 = vmatmul.msk.f32.gmra.mxu2 %vm1261_vm11, %v1248_v22 }
 0x25a   : > { %v929_v44 = vpop.permute.xlu1 %928  ;;  %v1373_v58 = vpop.f32.mrf.mxu1 }
 0x25b   : > { %v1217_v38 = vsel %vm1206_vm9, %v1192_v37, %v929_v44  ;;  %v880_v33 = vpop.permute.xlu0 %879  ;;  %v1019_v30 = vpop.permute.xlu2 %1018  ;;  %v1431_v37 = vmul.f32 %v3663_v55, %v1355_v34 }
 0x25c   : > { %v1242_v0 = vsel %vm1231_vm10, %v1217_v38, %v1005_v31  ;;  %v1205_v59 = vsel %vm1181_vm8, %v1180_v20, %v880_v33  ;;  %v1437_v38 = vmul.f32 %v3663_v55, %v1373_v58 }
 0x25d   : > { %2008 = vmatmul.msk.f32.gmra.mxu1 %vm1261_vm11, %v1242_v0 }
 0x262   : > { %v955_v61 = vpop.permute.xlu1 %954 }
 0x263   : > { %v1230_v3 = vsel %vm1206_vm9, %v1205_v59, %v955_v61  ;;  %v842_v56 = vpop.permute.xlu0 %841 }
 0x264   : > { %v1255_v2 = vsel %vm1231_vm10, %v1230_v3, %v1031_v42  ;;  %v1186_v46 = vsel %vm1181_vm8, %v3311_v51, %v842_v56  ;;  %v844_v51 = vpop.permute.xlu2 %843  ;;  %v1562_v3 = vrot.slane %v1501_v47, 1 }
 0x265   : > { %2021 = vmatmul.msk.f32.gmra.mxu3 %vm1261_vm11, %v1255_v2  ;;  %v1187_v54 = vsel %vm1181_vm8, %v3226_v11, %v844_v51  ;;  %v1459_v2 = vadd.f32 %v3670_v14, %v1431_v37 }
 0x268   : > { %v1412_v21 = vpop.f32.mrf.mxu3 }
 0x269   : > { %v1450_v49 = vmul.f32 %v3663_v55, %v1412_v21 }
 0x26a   : > { %v917_v36 = vpop.permute.xlu1 %916 }
 0x26b   : > { %v868_v17 = vpop.permute.xlu0 %867  ;;  %v1211_v62 = vsel %vm1206_vm9, %v1186_v46, %v917_v36  ;;  %v1478_v43 = vadd.f32 %v3670_v14, %v1450_v49 }
 0x26c   : > { %v1199_v8 = vsel %vm1181_vm8, %v1174_v1, %v868_v17  ;;  %v995_v40 = vpop.permute.xlu2 %994 }
 0x26d   : > { %v1502_v27 = vmax.f32 %v1478_v43, 0.0 }
 0x26f   : > { %v3684_v20 = vrot.slane %v1502_v27, 1 }
 0x272   : > { %v993_v32 = vpop.permute.xlu1 %992 }
 0x273   : > { %v943_v5 = vpop.permute.xlu0 %942  ;;  %v1236_v41 = vsel %vm1231_vm10, %v1211_v62, %v993_v32  ;;  %v1564_v32 = vsel %vm1531_vm12, %v1562_v3, %v3684_v20 }
 0x274   : > { %v1224_v29 = vsel %vm1206_vm9, %v1199_v8, %v943_v5  ;;  %2002 = vmatmul.msk.f32.gmra.mxu0 %vm1261_vm11, %v1236_v41 }
 0x275   : > { %v1249_v9 = vsel %vm1231_vm10, %v1224_v29, %v1019_v30  ;;  %v1465_v30 = vadd.f32 %v3670_v14, %v1437_v38 }
 0x276   : > { %2015 = vmatmul.msk.f32.gmra.mxu2 %vm1261_vm11, %v1249_v9  ;;  %v2162_v9 = vmov 1983009808  }
 0x277   : > { %v1594_v51 = vunpack.c.l.s4 %v2162_v9 }
 0x279   : > { %v1376_v26 = vpop.f32.mrf.mxu1  ;;  %v3708_v21 = vunpack.c.0.s8 %v1594_v51 }
 0x27a   : > { %v931_v4 = vpop.permute.xlu1 %930  ;;  %v1438_v0 = vmul.f32 %v3663_v55, %v1376_v26 }
 0x27b   : > { %v856_v6 = vpop.permute.xlu0 %855 }
 0x27c   : > { %v1193_v24 = vsel %vm1181_vm8, %v3293_v63, %v856_v6  ;;  %v1391_v63 = vpop.f32.mrf.mxu2  ;;  %v1466_v1 = vadd.f32 %v3670_v14, %v1438_v0 }
 0x27d   : > { %v1218_v60 = vsel %vm1206_vm9, %v1193_v24, %v931_v4  ;;  %v1443_v53 = vmul.f32 %v3663_v55, %v1391_v63  ;;  %v1483_v24 = vmax.f32 %v1459_v2, 0.0 }
 0x27f   : > { %v1471_v15 = vadd.f32 %v3670_v14, %v1443_v53 }
 0x281   : > { %v1495_v56 = vmax.f32 %v1471_v15, 0.0 }
 0x282   : > { %v919_v19 = vpop.permute.xlu1 %918 }
 0x283   : > { %v1212_v52 = vsel %vm1206_vm9, %v1187_v54, %v919_v19  ;;  %v1007_v13 = vpop.permute.xlu0 %1006  ;;  %v1552_v29 = vrot.slane %v1495_v56, 1  ;;  %v1489_v19 = vmax.f32 %v1465_v30, 0.0 }
 0x284   : > { %v1243_v35 = vsel %vm1231_vm10, %v1218_v60, %v1007_v13  ;;  %v1237_v18 = vsel %vm1231_vm10, %v1212_v52, %v995_v40  ;;  %v1394_v12 = vpop.f32.mrf.mxu2  ;;  %v1613_v52 = vrot.slane %v1564_v32, 4  ;;  %v1490_v60 = vmax.f32 %v1466_v1, 0.0 }
 0x285   : > { %2009 = vmatmul.msk.f32.gmra.mxu1 %vm1261_vm11, %v1243_v35  ;;  %2003 = vmatmul.msk.f32.gmra.mxu0 %vm1261_vm11, %v1237_v18  ;;  %v1444_v45 = vmul.f32 %v3663_v55, %v1394_v12  ;;  %v1542_v49 = vrot.slane %v1489_v19, 1 }
 0x286   : > { %v3715_v50 = vrot.slane %v1490_v60, 1 }
 0x287   : > { %v1415_v11 = vpop.f32.mrf.mxu3  ;;  %v1472_v57 = vadd.f32 %v3670_v14, %v1444_v45 }
 0x288   : > { %v1451_v4 = vmul.f32 %v3663_v55, %v1415_v11 }
 0x289   : > { %v1496_v33 = vmax.f32 %v1472_v57, 0.0 }
 0x28a   : > { %v1358_v48 = vpop.f32.mrf.mxu0  ;;  %v1479_v58 = vadd.f32 %v3670_v14, %v1451_v4 }
 0x28b   : > { %v1432_v59 = vmul.f32 %v3663_v55, %v1358_v48  ;;  %v3693_v46 = vrot.slane %v1496_v33, 1 }
 0x28c   : > { %v1503_v27 = vmax.f32 %v1479_v58, 0.0 }
 0x28d   : > { %v1460_v8 = vadd.f32 %v3670_v14, %v1432_v59  ;;  %v1554_v13 = vsel %vm1531_vm12, %v1552_v29, %v3693_v46 }
 0x28e   : > { %v1614_v12 = vsel %vm1589_vm13, %v1613_v52, %v1554_v13  ;;  %v1615_v48 = vrot.slane %v1554_v13, 4 }
 0x28f   : > { %v3658_v25 = vpop.f32.mrf.mxu2  ;;  %v1484_v35 = vmax.f32 %v1460_v8, 0.0 }
 0x290   : > { %v1445_v47 = vmul.f32 %v3663_v55, %v3658_v25 }
 0x291   : > { %v3717_v45 = vrot.slane %v1484_v35, 1 }
 0x292   : > { %v1473_v3 = vadd.f32 %v3670_v14, %v1445_v47 }
 0x294   : > { %v3672_v28 = vpop.f32.mrf.mxu1 }
 0x295   : > { %v1439_v0 = vmul.f32 %v3663_v55, %v3672_v28 }
 0x2a0   : > { %v1418_v39 = vpop.f32.mrf.mxu3 }
 0x2a1   : > { %v1452_v61 = vmul.f32 %v3663_v55, %v1418_v39  ;;  %v1532_v39 = vrot.slane %v1483_v24, 1  ;;  %v2163_v24 = vmov 1934713408  }
 0x2a3   : > { %v1480_v5 = vadd.f32 %v3670_v14, %v1452_v61  ;;  %v1534_v33 = vsel %vm1531_vm12, %v1532_v39, %v3717_v45  ;;  %v1616_v61 = vsel %vm1589_vm13, %v1564_v32, %v1615_v48 }
 0x2a4   : > { %v1591_v1 = vrot.slane %v1534_v33, 4  ;;  %v3751_v9 = vperm.slane %v1616_v61, %v3708_v21 }
 0x2a5   : > { %v1504_v18 = vmax.f32 %v1480_v5, 0.0 }
 0x2a7   : > { %v1567_v43 = vrot.slane %v1504_v18, 1 }
 0x2a9   : > { %v3696_v62 = vpop.f32.mrf.mxu0 }
 0x2aa   : > { %v1433_v35 = vmul.f32 %v3663_v55, %v3696_v62 }
 0x2b1   : > { %v1400_v16 = vpop.f32.mrf.mxu2 }
 0x2b2   : > { %v1446_v36 = vmul.f32 %v3663_v55, %v1400_v16 }
 0x2b4   : > { %v1474_v40 = vadd.f32 %v3670_v14, %v1446_v36 }
 0x2b6   : > { %v1498_v11 = vmax.f32 %v1474_v40, 0.0  ;;  %v1642_v40 = vunpack.c.l.s4 %v2163_v24 }
 0x2b8   : > { %v1557_v15 = vrot.slane %v1498_v11, 1  ;;  %v3767_v39 = vunpack.c.0.s8 %v1642_v40 }
 0x2bb   : > { %v1364_v16 = vpop.f32.mrf.mxu0 }
 0x2c2   : > { %v1382_v22 = vpop.f32.mrf.mxu1 }
 0x2c3   : > { %v1440_v26 = vmul.f32 %v3663_v55, %v1382_v22  ;;  %v1434_v22 = vmul.f32 %v3663_v55, %v1364_v16 }
 0x2c5   : > { %v1462_v36 = vadd.f32 %v3670_v14, %v1434_v22 }
 0x2d0   : > { %v1421_v7 = vpop.f32.mrf.mxu3 }
 0x2d1   : > { %v1453_v44 = vmul.f32 %v3663_v55, %v1421_v7  ;;  %v3723_v7 = vperm.slane %v1614_v12, %v3708_v21 }
 0x2d3   : > { %v1481_v17 = vadd.f32 %v3670_v14, %v1453_v44  ;;  %v1544_v44 = vsel %vm1531_vm12, %v1542_v49, %v3715_v50  ;;  %v1663_v2 = vrot.slane %v3723_v7, 4  ;;  %v1675_v49 = vrot.slane %v3751_v9, 4 }
 0x2d4   : > { %v1588_v30 = vrot.slane %v1544_v44, 4  ;;  %v1592_v60 = vsel %vm1589_vm13, %v1544_v44, %v1591_v1 }
 0x2d5   : > { %v1505_v54 = vmax.f32 %v1481_v17, 0.0  ;;  %v1600_v16 = vperm.slane %v1592_v60, %v3708_v21 }
 0x2d6   : > { %v1590_v4 = vsel %vm1589_vm13, %v1588_v30, %v1534_v33 }
 0x2d7   : > { %v3713_v34 = vrot.slane %v1505_v54, 1  ;;  %v1486_v54 = vmax.f32 %v1462_v36, 0.0 }
 0x2d8   : > { %v1403_v31 = vpop.f32.mrf.mxu2 }
 0x2d9   : > { %v1447_v42 = vmul.f32 %v3663_v55, %v1403_v31  ;;  %v1468_v31 = vadd.f32 %v3670_v14, %v1440_v26  ;;  %v1569_v37 = vsel %vm1531_vm12, %v1567_v43, %v3713_v34  ;;  %v1537_v43 = vrot.slane %v1486_v54, 1 }
 0x2da   : > { %v1385_v6 = vpop.f32.mrf.mxu1  ;;  %v1625_v56 = vrot.slane %v1569_v37, 4 }
 0x2db   : > { %v1475_v41 = vadd.f32 %v3670_v14, %v1447_v42  ;;  %v1441_v63 = vmul.f32 %v3663_v55, %v1385_v6  ;;  %v1565_v42 = vrot.slane %v1503_v27, 1  ;;  %v1492_v17 = vmax.f32 %v1468_v31, 0.0 }
 0x2dc   : > { %v1497_v6 = vmax.f32 %v1473_v3, 0.0 }
 0x2dd   : > { %v1499_v10 = vmax.f32 %v1475_v41, 0.0  ;;  %v1469_v53 = vadd.f32 %v3670_v14, %v1441_v63  ;;  %v1467_v41 = vadd.f32 %v3670_v14, %v1439_v0  ;;  %v3755_v51 = vsel %vm1531_vm12, %v3684_v20, %v1565_v42 }
 0x2de   : > { %v1547_v19 = vrot.slane %v1492_v17, 1  ;;  %v1596_v20 = vperm.slane %v1590_v4, %v3708_v21  ;;  %v1725_v11 = vrot.slane %v3755_v51, 4  ;;  %v1555_v26 = vrot.slane %v1497_v6, 1 }
 0x2df   : > { %v3719_v23 = vrot.slane %v1499_v10, 1  ;;  %v1493_v59 = vmax.f32 %v1469_v53, 0.0  ;;  %v1491_v63 = vmax.f32 %v1467_v41, 0.0  ;;  %v1651_v17 = vrot.slane %v1600_v16, 4 }
 0x2e0   : > { %v1639_v22 = vrot.slane %v1596_v20, 4  ;;  %v3783_v61 = vsel %vm1531_vm12, %v3693_v46, %v1555_v26 }
 0x2e1   : > { %v1559_v25 = vsel %vm1531_vm12, %v1557_v15, %v3719_v23  ;;  %v3747_v29 = vrot.slane %v1493_v59, 1  ;;  %v1545_v31 = vrot.slane %v1491_v63, 1 }
 0x2e2   : > { %v1626_v8 = vsel %vm1589_vm13, %v1625_v56, %v1559_v25  ;;  %v1627_v18 = vrot.slane %v1559_v25, 4 }
 0x2e3   : > { %v1632_v52 = vperm.slane %v1626_v8, %v3708_v21  ;;  %v1549_v58 = vsel %vm1531_vm12, %v1547_v19, %v3747_v29 }
 0x2e4   : > { %v1628_v48 = vsel %vm1589_vm13, %v1569_v37, %v1627_v18  ;;  %v1601_v27 = vrot.slane %v1549_v58, 4 }
 0x2e5   : > { %v1664_v53 = vsel %vm1589_vm13, %v1632_v52, %v1663_v2  ;;  %v1661_v33 = vrot.slane %v1632_v52, 4  ;;  %v1636_v37 = vperm.slane %v1628_v48, %v3708_v21 }
 0x2e6   : > { %v1672_v59 = vperm.slane %v1664_v53, %v3767_v39 }
 0x2e7   : > { %v1673_v24 = vrot.slane %v1636_v37, 4  ;;  %v1676_v18 = vsel %vm1589_vm13, %v1636_v37, %v1675_v49 }
 0x2e8   : > { %v1424_v57 = vpop.f32.mrf.mxu3  ;;  %v1689_v41 = vrot.slane %v1672_v59, 4 }
 0x2e9   : > { %v1454_v38 = vmul.f32 %v3663_v55, %v1424_v57  ;;  %v1461_v57 = vadd.f32 %v3670_v14, %v1433_v35 }
 0x2eb   : > { %v1482_v28 = vadd.f32 %v3670_v14, %v1454_v38  ;;  %v1485_v56 = vmax.f32 %v1461_v57, 0.0  ;;  %v1726_v57 = vsel %vm1589_vm13, %v1725_v11, %v3783_v61 }
 0x2ed   : > { %v1506_v10 = vmax.f32 %v1482_v28, 0.0  ;;  %v3797_v28 = vsel %vm1531_vm12, %v3715_v50, %v1545_v31  ;;  %v1535_v50 = vrot.slane %v1485_v56, 1 }
 0x2ee   : > { %v1701_v31 = vrot.slane %v3797_v28, 4 }
 0x2ef   : > { %v1570_v47 = vrot.slane %v1506_v10, 1 }
 0x2f1   : > { %v1367_v5 = vpop.f32.mrf.mxu0  ;;  %v3790_v2 = vsel %vm1531_vm12, %v3713_v34, %v1570_v47  ;;  %v1662_v34 = vsel %vm1589_vm13, %v1661_v33, %v3723_v7  ;;  %v1536_v47 = vsel %vm1531_vm12, %v3717_v45, %v1535_v50 }
 0x2f2   : > { %v1435_v32 = vmul.f32 %v3663_v55, %v1367_v5  ;;  %v1737_v40 = vrot.slane %v3790_v2, 4  ;;  %v1702_v37 = vsel %vm1589_vm13, %v1701_v31, %v1536_v47 }
 0x2f4   : > { %v1463_v13 = vadd.f32 %v3670_v14, %v1435_v32 }
 0x2f6   : > { %v1487_v12 = vmax.f32 %v1463_v13, 0.0 }
 0x2f8   : > { %v3771_v62 = vrot.slane %v1487_v12, 1 }
 0x2f9   : > { %v1406_v15 = vpop.f32.mrf.mxu2 }
 0x2fa   : > { %v1539_v44 = vsel %vm1531_vm12, %v1537_v43, %v3771_v62  ;;  %v1448_v38 = vmul.f32 %v3663_v55, %v1406_v15  ;;  %v1674_v43 = vsel %vm1589_vm13, %v1673_v24, %v3751_v9  ;;  %v1684_v9 = vperm.slane %v1676_v18, %v3767_v39 }
 0x2fb   : > { %v1602_v0 = vsel %vm1589_vm13, %v1601_v27, %v1539_v44  ;;  %v1603_v25 = vrot.slane %v1539_v44, 4 }
 0x2fc   : > { %v1608_v42 = vperm.slane %v1602_v0, %v3708_v21  ;;  %v1476_v3 = vadd.f32 %v3670_v14, %v1448_v38  ;;  %v1697_v45 = vrot.slane %v1684_v9, 4 }
 0x2fd   : > { %v1604_v36 = vsel %vm1589_vm13, %v1549_v58, %v1603_v25  ;;  %v1668_v58 = vperm.slane %v1662_v34, %v3767_v39  ;;  %v1727_v34 = vrot.slane %v3783_v61, 4 }
 0x2fe   : > { %v1612_v30 = vperm.slane %v1604_v36, %v3708_v21  ;;  %v1637_v1 = vrot.slane %v1608_v42, 4  ;;  %v1500_v8 = vmax.f32 %v1476_v3, 0.0  ;;  %v1640_v46 = vsel %vm1589_vm13, %v1608_v42, %v1639_v22 }
 0x2ff   : > { %v1648_v5 = vperm.slane %v1640_v46, %v3767_v39  ;;  %v1685_v11 = vrot.slane %v1668_v58, 4  ;;  %v1732_v3 = vperm.slane %v1726_v57, %v3708_v21  ;;  %v1728_v61 = vsel %vm1589_vm13, %v3755_v51, %v1727_v34 }
 0x300   : > { %v1560_v32 = vrot.slane %v1500_v8, 1  ;;  %v1638_v4 = vsel %vm1589_vm13, %v1637_v1, %v1596_v20  ;;  %v1649_v6 = vrot.slane %v1612_v30, 4 }
 0x301   : > { %v1690_v54 = vsel %vm1589_vm13, %v1689_v41, %v1648_v5  ;;  %v1691_v19 = vrot.slane %v1648_v5, 4  ;;  %v1644_v52 = vperm.slane %v1638_v4, %v3767_v39  ;;  %v1708_v5 = vperm.slane %v1702_v37, %v3708_v21 }
 0x302   : > { %v1561_v13 = vsel %vm1531_vm12, %v3719_v23, %v1560_v32  ;;  %v1388_v60 = vpop.f32.mrf.mxu1  ;;  %1818 = vrot.lane.b32.xlu1 %v1690_v54, %s2157_s6  ;;  %v1370_v7 = vpop.f32.mrf.mxu0  ;;  %v1650_v35 = vsel %vm1589_vm13, %v1649_v6, %v1600_v16  ;;  %s2164_s6 = smov 40   ;;  %v1703_v6 = vrot.slane %v1536_v47, 4  ;;  %v1775_v50 = vrot.slane %v1732_v3, 4 }
 0x303   : > { %v1738_v10 = vsel %vm1589_vm13, %v1737_v40, %v1561_v13  ;;  %v1442_v20 = vmul.f32 %v3663_v55, %v1388_v60  ;;  %v1436_v63 = vmul.f32 %v3663_v55, %v1370_v7  ;;  %v1692_v12 = vsel %vm1589_vm13, %v1672_v59, %v1691_v19 }
 0x304   : > { %v1687_v26 = vrot.slane %v1644_v52, 4  ;;  %v1656_v23 = vperm.slane %v1650_v35, %v3767_v39  ;;  %v1744_v16 = vperm.slane %v1738_v10, %v3708_v21  ;;  %1822 = vrot.lane.b32.xlu2 %v1692_v12, %s2160_s9  ;;  %v1652_v55 = vsel %vm1589_vm13, %v1612_v30, %v1651_v17  ;;  %s2167_s9 = smov 64  }
 0x305   : > { %v1470_v49 = vadd.f32 %v3670_v14, %v1442_v20  ;;  %v1464_v53 = vadd.f32 %v3670_v14, %v1436_v63  ;;  %v1680_v14 = vperm.slane %v1674_v43, %v3767_v39  ;;  %v1739_v44 = vrot.slane %v1561_v13, 4 }
 0x306   : > { %v1688_v48 = vsel %vm1589_vm13, %v1668_v58, %v1687_v26  ;;  %v1695_v27 = vrot.slane %v1656_v23, 4  ;;  %v1660_v38 = vperm.slane %v1652_v55, %v3767_v39  ;;  %v1773_v33 = vrot.slane %v1744_v16, 4 }
 0x307   : > { %v1494_v15 = vmax.f32 %v1470_v49, 0.0  ;;  %v1488_v22 = vmax.f32 %v1464_v53, 0.0  ;;  %1814 = vrot.lane.b32.xlu0 %v1688_v48, %s2155_s30  ;;  %v3839_v42 = vsel %vm1589_vm13, %v1685_v11, %v1644_v52  ;;  %v1693_v17 = vrot.slane %v1680_v14, 4  ;;  %s2165_s30 = smov 48  }
 0x308   : > { %v1696_v59 = vsel %vm1589_vm13, %v1680_v14, %v1695_v27  ;;  %v1740_v30 = vsel %vm1589_vm13, %v3790_v2, %v1739_v44  ;;  %v1698_v46 = vsel %vm1589_vm13, %v1697_v45, %v1660_v38  ;;  %v1774_v41 = vsel %vm1589_vm13, %v1773_v33, %v1732_v3 }
 0x309   : > { %v1550_v0 = vrot.slane %v1494_v15, 1  ;;  %v1540_v25 = vrot.slane %v1488_v22, 1  ;;  %v1694_v32 = vsel %vm1589_vm13, %v1693_v17, %v1656_v23  ;;  %v1748_v2 = vperm.slane %v1740_v30, %v3708_v21 }
 0x30a   : > { %1830 = vrot.lane.b32.xlu1 %v1696_v59, %s2164_s6  ;;  %v1780_v24 = vperm.slane %v1774_v41, %v3767_v39  ;;  %v1751_v40 = vrot.slane %v1708_v5, 4  ;;  %v1699_v52 = vrot.slane %v1660_v38, 4  ;;  %v1704_v35 = vsel %vm1589_vm13, %v3797_v28, %v1703_v6 }
 0x30b   : > { %v1551_v56 = vsel %vm1531_vm12, %v3747_v29, %v1550_v0  ;;  %v1541_v36 = vsel %vm1531_vm12, %v3771_v62, %v1540_v25  ;;  %v1785_v7 = vrot.slane %v1748_v2, 4  ;;  %v1736_v20 = vperm.slane %v1728_v61, %v3708_v21 }
 0x30c   : > { %v1713_v1 = vrot.slane %v1551_v56, 4  ;;  %v1715_v8 = vrot.slane %v1541_v36, 4  ;;  %1834 = vrot.lane.b32.xlu2 %v1698_v46, %s2165_s30  ;;  %v1797_v10 = vrot.slane %v1780_v24, 4  ;;  %v1776_v63 = vsel %vm1589_vm13, %v1744_v16, %v1775_v50 }
 0x30d   : > { %v1700_v51 = vsel %vm1589_vm13, %v1684_v9, %v1699_v52  ;;  %v1712_v28 = vperm.slane %v1704_v35, %v3708_v21  ;;  %v1786_v43 = vsel %vm1589_vm13, %v1785_v7, %v1736_v20  ;;  %v1784_v16 = vperm.slane %v1776_v63, %v3767_v39 }
 0x30e   : > { %v1714_v29 = vsel %vm1589_vm13, %v1713_v1, %v1541_v36  ;;  %v1716_v62 = vsel %vm1589_vm13, %v1551_v56, %v1715_v8  ;;  %v1792_v57 = vperm.slane %v1786_v43, %v3767_v39  ;;  %v1787_v27 = vrot.slane %v1736_v20, 4 }
 0x30f   : > { %v1720_v4 = vperm.slane %v1714_v29, %v3708_v21  ;;  %1826 = vrot.lane.b32.xlu0 %v1694_v32, %s2161_s10  ;;  %v1724_v54 = vperm.slane %v1716_v62, %v3708_v21  ;;  %s2168_s10 = smov 72   ;;  %v1763_v48 = vrot.slane %v1712_v28, 4  ;;  %v1801_v9 = vrot.slane %v1784_v16, 4 }
 0x310   : > { %v1788_v15 = vsel %vm1589_vm13, %v1748_v2, %v1787_v27  ;;  %v1805_v31 = vrot.slane %v1792_v57, 4 }
 0x311   : > { %v1749_v19 = vrot.slane %v1720_v4, 4  ;;  %v1752_v60 = vsel %vm1589_vm13, %v1720_v4, %v1751_v40  ;;  %v1761_v58 = vrot.slane %v1724_v54, 4  ;;  %v1764_v21 = vsel %vm1589_vm13, %v1724_v54, %v1763_v48 }
 0x312   : > { %v1760_v23 = vperm.slane %v1752_v60, %v3767_v39  ;;  %v1772_v38 = vperm.slane %v1764_v21, %v3767_v39  ;;  %v1796_v11 = vperm.slane %v1788_v15, %v3767_v39 }
 0x313   : > { %v1750_v13 = vsel %vm1589_vm13, %v1749_v19, %v1708_v5  ;;  %v1762_v53 = vsel %vm1589_vm13, %v1761_v58, %v1712_v28 }
 0x314   : > { %v1756_v18 = vperm.slane %v1750_v13, %v3767_v39  ;;  %v1803_v55 = vrot.slane %v1760_v23, 4  ;;  %v1768_v47 = vperm.slane %v1762_v53, %v3767_v39  ;;  %v1802_v22 = vsel %vm1589_vm13, %v1801_v9, %v1760_v23 }
 0x315   : > { %v1809_v0 = vrot.slane %v1796_v11, 4  ;;  %v1811_v25 = vrot.slane %v1772_v38, 4 }
 0x316   : > { %v1798_v12 = vsel %vm1589_vm13, %v1797_v10, %v1756_v18  ;;  %v1799_v26 = vrot.slane %v1756_v18, 4  ;;  %v1804_v14 = vsel %vm1589_vm13, %v1784_v16, %v1803_v55  ;;  %v1806_v44 = vsel %vm1589_vm13, %v1805_v31, %v1768_v47 }
 0x317   : > { %1838 = vrot.lane.b32.xlu0 %v1700_v51, %s2166_s8  ;;  %1842 = vrot.lane.b32.xlu1 %v1798_v12, %s2167_s9  ;;  %v1807_v33 = vrot.slane %v1768_v47, 4  ;;  %v1810_v37 = vsel %vm1589_vm13, %v1809_v0, %v1772_v38  ;;  %v1812_v45 = vsel %vm1589_vm13, %v1796_v11, %v1811_v25 }
 0x318   : > { %v1800_v49 = vsel %vm1589_vm13, %v1780_v24, %v1799_v26 }
 0x319   : > { %1846 = vrot.lane.b32.xlu2 %v1800_v49, %s2168_s10  ;;  %v1808_v59 = vsel %vm1589_vm13, %v1792_v57, %v1807_v33 }
 0x31f   : > { %1850 = vrot.lane.b32.xlu0 %v1802_v22, %s2169_s11  ;;  %1854 = vrot.lane.b32.xlu1 %v1804_v14, %s2170_s12 }
 0x321   : > { %1858 = vrot.lane.b32.xlu2 %v1806_v44, %s2171_s13 }
 0x327   : > { %1862 = vrot.lane.b32.xlu0 %v1808_v59, %s2172_s14  ;;  %1866 = vrot.lane.b32.xlu1 %v1810_v37, %s2173_s22 }
 0x329   : > { %1870 = vrot.lane.b32.xlu2 %v1812_v45, %s2174_s23 }
 0x35e   : > { %v1823_v3 = vpop.permute.xlu2 %1822 }
 0x366   : > { %v1835_v36 = vpop.permute.xlu2 %1834 }
 0x373   : > { %v1847_v41 = vpop.permute.xlu2 %1846 }
 0x374   : > { %v1819_v56 = vpop.permute.xlu1 %1818 }
 0x379   : > { %v1815_v39 = vpop.permute.xlu0 %1814 }
 0x37a   : > { %v1873_v17 = vsel %vm1081_vm3, %v3839_v42, %v1815_v39  ;;  %vm1887_vm3 = vcmask 654336  }
 0x37b   : > { %v1874_v30 = vsel %vm1131_vm5, %v1873_v17, %v1819_v56  ;;  %v1859_v4 = vpop.permute.xlu2 %1858  ;;  %vm1891_vm5 = vcmask 785408  }
 0x37c   : > { %v1831_v1 = vpop.permute.xlu1 %1830  ;;  %v1875_v46 = vsel %vm1181_vm8, %v1874_v30, %v1823_v3  ;;  %vm1897_vm8 = vcmask 982016  }
 0x381   : > { %v1827_v8 = vpop.permute.xlu0 %1826 }
 0x382   : > { %v1876_v5 = vsel %vm1231_vm10, %v1875_v46, %v1827_v8 }
 0x383   : > { %v1878_v34 = vsel %vm1877_vm14, %v1876_v5, %v1831_v1  ;;  %v1871_v60 = vpop.permute.xlu2 %1870 }
 0x384   : > { %v1880_v32 = vsel %vm1879_vm15, %v1878_v34, %v1835_v36 }
 0x389   : > { %v1839_v29 = vpop.permute.xlu0 %1838  ;;  %v1843_v62 = vpop.permute.xlu1 %1842 }
 0x38a   : > { %v1882_v2 = vsel %vm1881_vm0, %v1880_v32, %v1839_v29 }
 0x38b   : > { %v1884_v42 = vsel %vm1883_vm1, %v1882_v2, %v1843_v62 }
 0x38c   : > { %v1886_v40 = vsel %vm1885_vm2, %v1884_v42, %v1847_v41 }
 0x391   : > { %v1851_v6 = vpop.permute.xlu0 %1850  ;;  %v1855_v24 = vpop.permute.xlu1 %1854 }
 0x392   : > { %v1888_v54 = vsel %vm1887_vm3, %v1886_v40, %v1851_v6 }
 0x393   : > { %v1890_v19 = vsel %vm1889_vm4, %v1888_v54, %v1855_v24 }
 0x394   : > { %v1892_v52 = vsel %vm1891_vm5, %v1890_v19, %v1859_v4 }
 0x399   : > { %v1863_v61 = vpop.permute.xlu0 %1862  ;;  %v1867_v50 = vpop.permute.xlu1 %1866 }
 0x39a   : > { %v1894_v13 = vsel %vm1893_vm6, %v1892_v52, %v1863_v61 }
 0x39b   : > { %v1896_v7 = vsel %vm1895_vm7, %v1894_v13, %v1867_v50 }
 0x39c   : > { %v1898_v35 = vsel %vm1897_vm8, %v1896_v7, %v1871_v60 }
 0x39d   : > { %1899 = vst [vmem:[%s231_s29] sm:$0xff] %v1898_v35 }
 0x39e PF: > { %s14_s19 = sadd.s32 1, %s2152_s19   ;;  %s4126_s15 = smov %s2144_s17 }
 0x39f   : > { %p11_p7 = scmp.ge.s32.totalorder %s14_s19, 6   ;;  %s4127_s16 = smov %s2148_s18 }
 0x3a0   : > { %s4128_s17 = smov %s4131_s20  ;;  %s4129_s18 = smov %s4135_s21 }
 0x3a1   :  { %13 = sbr.rel (!%p11_p7) target bundleno = 3 (0x3), region = 66 }

</bundles_post_ra>
